<compile_context>
chip_gen: v7x
topology: tpu7x:2x2x1
jax: 0.10.0
libtpu: 0.0.40
codegen_flags: <defaults>
</compile_context>

<pallas_src>
import functools

import jax
import jax.numpy as jnp
from jax.experimental import pallas as pl
from jax.experimental.pallas import tpu as pltpu


def punchnet_kernel(x_ref, mask_ref, w1_ref, b1_ref, w2_ref, b2_ref,
                    w3_ref, b3_ref, out_ref, *, taps):
    # x_ref   : (1, 1, P)  one zero-padded image, flattened on the lane axis
    # mask_ref: (1, P)     1.0 at real pixels, 0.0 on the padding ring / tail
    # w1_ref  : (16, 9)    conv1 weight  [c_out, tap]          (tap = ky*3+kx)
    # b1_ref  : (16, 1)
    # w2_ref  : (16, 144)  conv2 weight  [c_out, tap*16 + c_in]
    # b2_ref  : (16, 1)
    # w3_ref  : (9, 16)    conv3 weight  [tap, c_in]
    # b3_ref  : (1, 1)
    # out_ref : (1, 1, P)
    P = x_ref.shape[-1]
    C = w1_ref.shape[0]

    x = x_ref[0]            # (1, P)
    mask = mask_ref[...]    # (1, P)
    w1 = w1_ref[...]
    b1 = b1_ref[...]
    w2 = w2_ref[...]
    b2 = b2_ref[...]
    w3 = w3_ref[...]
    b3 = b3_ref[...]

    # ---- Conv1: 1 -> 16.  9 lane-rolled taps + broadcast FMA on (16, P). ----
    acc1 = jnp.zeros((C, P), jnp.float32)
    for t, off in enumerate(taps):
        x_t = pltpu.roll(x, (-off) % P, 1)          # x_t[:, p] = x[:, p + off]
        acc1 = acc1 + w1[:, t:t + 1] * x_t          # (16,1)*(1,P) -> (16,P)
    h1 = jnp.maximum(acc1 + b1, 0.0) * mask         # ReLU, re-zero pad ring
    # Dropout2d(0.3): identity at inference.

    # ---- Conv2: 16 -> 16 as ONE fused im2col matmul, K = 9*16 = 144. ----
    cat = jnp.concatenate(
        [pltpu.roll(h1, (-off) % P, 1) for off in taps], axis=0)   # (144, P)
    h2 = jnp.dot(w2, cat, preferred_element_type=jnp.float32) + b2
    h2 = jnp.maximum(h2, 0.0) * mask                               # (16, P)
    # Dropout2d(0.3): identity at inference.

    # ---- Conv3: 16 -> 1.  Contract channels first (one matmul), then the
    # 3x3 stencil is 9 lane-rolled row additions:  out[p] = sum_t g[t, p+off_t]
    g = jnp.dot(w3, h2, preferred_element_type=jnp.float32)        # (9, P)
    acc3 = jnp.zeros((1, P), jnp.float32)
    for t, off in enumerate(taps):
        acc3 = acc3 + pltpu.roll(g[t:t + 1, :], (-off) % P, 1)

    y = jnp.tanh(acc3 + b3)
    out_ref[0] = jnp.clip(y, -1.0, 1.0)             # lane-dense (1, P) store


def _round_up(n, m):
    return ((n + m - 1) // m) * m


@jax.jit
def punchnet_forward(x_nchw, params):
    """x_nchw: (N, 1, H, W) float32 -> (N, 1, H, W) float32."""
    w1, b1, w2, b2, w3, b3 = params
    N, _, H, W = x_nchw.shape
    C = w1.shape[0]
    Hp, Wp = H + 2, W + 2
    P = _round_up(Hp * Wp, 128)
    # flat-index offset of each 3x3 tap inside the padded image
    taps = tuple((ky - 1) * Wp + (kx - 1) for ky in range(3) for kx in range(3))

    # flatten each zero-padded image onto the lane axis (length P, mult of 128)
    xp = jnp.pad(x_nchw[:, 0].astype(jnp.float32), ((0, 0), (1, 1), (1, 1)))
    x_flat = jnp.pad(xp.reshape(N, Hp * Wp), ((0, 0), (0, P - Hp * Wp)))
    x_in = x_flat.reshape(N, 1, P)

    # interior mask: 1 at real pixels, 0 on the padding ring and the lane tail
    yy = jax.lax.broadcasted_iota(jnp.int32, (Hp, Wp), 0)
    xx = jax.lax.broadcasted_iota(jnp.int32, (Hp, Wp), 1)
    interior = (yy >= 1) & (yy <= H) & (xx >= 1) & (xx <= W)
    mask = jnp.pad(interior.reshape(1, Hp * Wp).astype(jnp.float32),
                   ((0, 0), (0, P - Hp * Wp)))

    kernel = functools.partial(punchnet_kernel, taps=taps)

    out_flat = pl.pallas_call(
        kernel,
        out_shape=jax.ShapeDtypeStruct((N, 1, P), jnp.float32),
        grid_spec=pltpu.PrefetchScalarGridSpec(
            num_scalar_prefetch=0,
            grid=(N,),
            in_specs=[
                pl.BlockSpec((1, 1, P), lambda n: (n, 0, 0)),   # x (per image)
                pl.BlockSpec((1, P), lambda n: (0, 0)),         # interior mask
                pl.BlockSpec((C, 9), lambda n: (0, 0)),         # w1
                pl.BlockSpec((C, 1), lambda n: (0, 0)),         # b1
                pl.BlockSpec((C, 9 * C), lambda n: (0, 0)),     # w2
                pl.BlockSpec((C, 1), lambda n: (0, 0)),         # b2
                pl.BlockSpec((9, C), lambda n: (0, 0)),         # w3
                pl.BlockSpec((1, 1), lambda n: (0, 0)),         # b3
            ],
            out_specs=pl.BlockSpec((1, 1, P), lambda n: (n, 0, 0)),
        ),
        compiler_params=pltpu.CompilerParams(
            dimension_semantics=("parallel",)),
    )(x_in, mask, w1, b1, w2, b2, w3, b3)

    out = out_flat.reshape(N, P)[:, :Hp * Wp].reshape(N, Hp, Wp)
    return out[:, 1:H + 1, 1:W + 1].reshape(N, 1, H, W)


def init_params(key):
    """Deterministic init. PyTorch Conv2d weights are (O, I, kH, kW); the
    kernel stores them flattened over (tap, c_in) with c_out leading."""
    k1, k2, k3, k4, k5, k6 = jax.random.split(key, 6)
    C = 16

    w1_oihw = jax.random.normal(k1, (C, 1, 3, 3), jnp.float32) * 0.2
    b1 = jax.random.normal(k2, (C,), jnp.float32) * 0.05
    w2_oihw = jax.random.normal(k3, (C, C, 3, 3), jnp.float32) * 0.1
    b2 = jax.random.normal(k4, (C,), jnp.float32) * 0.05
    w3_oihw = jax.random.normal(k5, (1, C, 3, 3), jnp.float32) * 0.1
    b3 = jax.random.normal(k6, (1,), jnp.float32) * 0.05

    # kernel-friendly layouts (tap index t = ky*3 + kx)
    w1_k = w1_oihw.reshape(C, 9)                                    # (c_out, t)
    w2_k = jnp.transpose(w2_oihw, (0, 2, 3, 1)).reshape(C, 9 * C)   # (c_out, t*C+c_in)
    w3_k = jnp.transpose(w3_oihw[0], (1, 2, 0)).reshape(9, C)       # (t, c_in)

    params = (w1_k, b1.reshape(C, 1), w2_k, b2.reshape(C, 1),
              w3_k, b3.reshape(1, 1))
    return params, (w1_oihw, b1, w2_oihw, b2, w3_oihw, b3)


def reference_forward(x_nchw, torch_style_params):
    """Pure-JAX NCHW reference replicating the PyTorch module (eval mode)."""
    w1, b1, w2, b2, w3, b3 = torch_style_params
    dn = jax.lax.conv_dimension_numbers(x_nchw.shape, w1.shape,
                                        ("NCHW", "OIHW", "NCHW"))

    def conv(x, w, b):
        y = jax.lax.conv_general_dilated(x, w, (1, 1), ((1, 1), (1, 1)),
                                         dimension_numbers=dn,
                                         precision=jax.lax.Precision.HIGHEST)
        return y + b.reshape(1, -1, 1, 1)

    h = jax.nn.relu(conv(x_nchw, w1, b1))
    h = jax.nn.relu(conv(h, w2, b2))
    y = jnp.tanh(conv(h, w3, b3))
    return jnp.clip(y, -1.0, 1.0)


if __name__ == "__main__":
    key = jax.random.PRNGKey(0)
    kx, kp = jax.random.split(key)

    N, H, W = 2, 16, 16
    x = jax.random.normal(kx, (N, 1, H, W), jnp.float32)

    params, torch_style = init_params(kp)

    out = punchnet_forward(x, params)
    out = jax.block_until_ready(out)

    ref = reference_forward(x, torch_style)
    assert out.shape == (N, 1, H, W)
    # Kernel matmuls run at default MXU precision (single bf16 pass) while the
    # reference is f32-HIGHEST, so allow a correspondingly looser tolerance;
    # structural/indexing bugs would produce O(0.1+) errors and still fail.
    max_err = float(jnp.max(jnp.abs(out - ref)))
    assert max_err < 5e-2, f"max abs err {max_err}"

    print("KERNEL_OK")
</pallas_src>

<mosaic_0001>
module attributes {stable_mosaic.version = 11 : i64} {
  func.func @punchnet_kernel(%arg0: i32, %arg1: memref<1x1x384xf32, #tpu.memory_space<vmem>>, %arg2: memref<1x384xf32, #tpu.memory_space<vmem>>, %arg3: memref<16x9xf32, #tpu.memory_space<vmem>>, %arg4: memref<16x1xf32, #tpu.memory_space<vmem>>, %arg5: memref<16x144xf32, #tpu.memory_space<vmem>>, %arg6: memref<16x1xf32, #tpu.memory_space<vmem>>, %arg7: memref<9x16xf32, #tpu.memory_space<vmem>>, %arg8: memref<1x1xf32, #tpu.memory_space<vmem>>, %arg9: memref<1x1x384xf32, #tpu.memory_space<vmem>>) attributes {dimension_semantics = [#tpu.dimension_semantics<parallel>], iteration_bounds = array<i64: 2>, scalar_prefetch = 0 : i64, scratch_operands = 0 : i64, tpu.core_type = #tpu.core_type<tc>, window_params = [{transform_indices = @transform_0, window_bounds = array<i64: 1, 1, 384>}, {pipeline_mode = #tpu.pipeline_mode<synchronous>, transform_indices = @transform_1, window_bounds = array<i64: 1, 384>}, {pipeline_mode = #tpu.pipeline_mode<synchronous>, transform_indices = @transform_2, window_bounds = array<i64: 16, 9>}, {pipeline_mode = #tpu.pipeline_mode<synchronous>, transform_indices = @transform_3, window_bounds = array<i64: 16, 1>}, {pipeline_mode = #tpu.pipeline_mode<synchronous>, transform_indices = @transform_4, window_bounds = array<i64: 16, 144>}, {pipeline_mode = #tpu.pipeline_mode<synchronous>, transform_indices = @transform_5, window_bounds = array<i64: 16, 1>}, {pipeline_mode = #tpu.pipeline_mode<synchronous>, transform_indices = @transform_6, window_bounds = array<i64: 9, 16>}, {pipeline_mode = #tpu.pipeline_mode<synchronous>, transform_indices = @transform_7, window_bounds = array<i64: 1, 1>}, {transform_indices = @transform_8, window_bounds = array<i64: 1, 1, 384>}]} {
    %c0 = arith.constant 0 : index
    %c0_0 = arith.constant 0 : index
    %c0_1 = arith.constant 0 : index
    %0 = vector.load %arg1[%c0, %c0_0, %c0_1] : memref<1x1x384xf32, #tpu.memory_space<vmem>>, vector<1x1x384xf32>
    %1 = vector.shape_cast %0 : vector<1x1x384xf32> to vector<1x384xf32>
    %c0_2 = arith.constant 0 : index
    %c0_3 = arith.constant 0 : index
    %2 = vector.load %arg2[%c0_2, %c0_3] : memref<1x384xf32, #tpu.memory_space<vmem>>, vector<1x384xf32>
    %c0_4 = arith.constant 0 : index
    %c0_5 = arith.constant 0 : index
    %3 = vector.load %arg3[%c0_4, %c0_5] : memref<16x9xf32, #tpu.memory_space<vmem>>, vector<16x9xf32>
    %c0_6 = arith.constant 0 : index
    %c0_7 = arith.constant 0 : index
    %4 = vector.load %arg4[%c0_6, %c0_7] : memref<16x1xf32, #tpu.memory_space<vmem>>, vector<16x1xf32>
    %c0_8 = arith.constant 0 : index
    %c0_9 = arith.constant 0 : index
    %5 = vector.load %arg5[%c0_8, %c0_9] : memref<16x144xf32, #tpu.memory_space<vmem>>, vector<16x144xf32>
    %c0_10 = arith.constant 0 : index
    %c0_11 = arith.constant 0 : index
    %6 = vector.load %arg6[%c0_10, %c0_11] : memref<16x1xf32, #tpu.memory_space<vmem>>, vector<16x1xf32>
    %c0_12 = arith.constant 0 : index
    %c0_13 = arith.constant 0 : index
    %7 = vector.load %arg7[%c0_12, %c0_13] : memref<9x16xf32, #tpu.memory_space<vmem>>, vector<9x16xf32>
    %c0_14 = arith.constant 0 : index
    %c0_15 = arith.constant 0 : index
    %8 = vector.load %arg8[%c0_14, %c0_15] : memref<1x1xf32, #tpu.memory_space<vmem>>, vector<1x1xf32>
    %cst = arith.constant 0.000000e+00 : f32
    %9 = vector.broadcast %cst : f32 to vector<16x384xf32>
    %c19_i32 = arith.constant 19 : i32
    %10 = tpu.dynamic_rotate %1 by %c19_i32 dim 1 : vector<1x384xf32>, i32 -> vector<1x384xf32>
    %11 = vector.extract_strided_slice %3 {offsets = [0, 0], sizes = [16, 1], strides = [1, 1]} : vector<16x9xf32> to vector<16x1xf32>
    %12 = vector.broadcast %11 : vector<16x1xf32> to vector<16x384xf32>
    %13 = vector.broadcast %10 : vector<1x384xf32> to vector<16x384xf32>
    %14 = arith.mulf %12, %13 : vector<16x384xf32>
    %15 = arith.addf %9, %14 : vector<16x384xf32>
    %c18_i32 = arith.constant 18 : i32
    %16 = tpu.dynamic_rotate %1 by %c18_i32 dim 1 : vector<1x384xf32>, i32 -> vector<1x384xf32>
    %17 = vector.extract_strided_slice %3 {offsets = [0, 1], sizes = [16, 1], strides = [1, 1]} : vector<16x9xf32> to vector<16x1xf32>
    %18 = vector.broadcast %17 : vector<16x1xf32> to vector<16x384xf32>
    %19 = vector.broadcast %16 : vector<1x384xf32> to vector<16x384xf32>
    %20 = arith.mulf %18, %19 : vector<16x384xf32>
    %21 = arith.addf %15, %20 : vector<16x384xf32>
    %c17_i32 = arith.constant 17 : i32
    %22 = tpu.dynamic_rotate %1 by %c17_i32 dim 1 : vector<1x384xf32>, i32 -> vector<1x384xf32>
    %23 = vector.extract_strided_slice %3 {offsets = [0, 2], sizes = [16, 1], strides = [1, 1]} : vector<16x9xf32> to vector<16x1xf32>
    %24 = vector.broadcast %23 : vector<16x1xf32> to vector<16x384xf32>
    %25 = vector.broadcast %22 : vector<1x384xf32> to vector<16x384xf32>
    %26 = arith.mulf %24, %25 : vector<16x384xf32>
    %27 = arith.addf %21, %26 : vector<16x384xf32>
    %c1_i32 = arith.constant 1 : i32
    %28 = tpu.dynamic_rotate %1 by %c1_i32 dim 1 : vector<1x384xf32>, i32 -> vector<1x384xf32>
    %29 = vector.extract_strided_slice %3 {offsets = [0, 3], sizes = [16, 1], strides = [1, 1]} : vector<16x9xf32> to vector<16x1xf32>
    %30 = vector.broadcast %29 : vector<16x1xf32> to vector<16x384xf32>
    %31 = vector.broadcast %28 : vector<1x384xf32> to vector<16x384xf32>
    %32 = arith.mulf %30, %31 : vector<16x384xf32>
    %33 = arith.addf %27, %32 : vector<16x384xf32>
    %c0_i32 = arith.constant 0 : i32
    %34 = tpu.dynamic_rotate %1 by %c0_i32 dim 1 : vector<1x384xf32>, i32 -> vector<1x384xf32>
    %35 = vector.extract_strided_slice %3 {offsets = [0, 4], sizes = [16, 1], strides = [1, 1]} : vector<16x9xf32> to vector<16x1xf32>
    %36 = vector.broadcast %35 : vector<16x1xf32> to vector<16x384xf32>
    %37 = vector.broadcast %34 : vector<1x384xf32> to vector<16x384xf32>
    %38 = arith.mulf %36, %37 : vector<16x384xf32>
    %39 = arith.addf %33, %38 : vector<16x384xf32>
    %c383_i32 = arith.constant 383 : i32
    %40 = tpu.dynamic_rotate %1 by %c383_i32 dim 1 : vector<1x384xf32>, i32 -> vector<1x384xf32>
    %41 = vector.extract_strided_slice %3 {offsets = [0, 5], sizes = [16, 1], strides = [1, 1]} : vector<16x9xf32> to vector<16x1xf32>
    %42 = vector.broadcast %41 : vector<16x1xf32> to vector<16x384xf32>
    %43 = vector.broadcast %40 : vector<1x384xf32> to vector<16x384xf32>
    %44 = arith.mulf %42, %43 : vector<16x384xf32>
    %45 = arith.addf %39, %44 : vector<16x384xf32>
    %c367_i32 = arith.constant 367 : i32
    %46 = tpu.dynamic_rotate %1 by %c367_i32 dim 1 : vector<1x384xf32>, i32 -> vector<1x384xf32>
    %47 = vector.extract_strided_slice %3 {offsets = [0, 6], sizes = [16, 1], strides = [1, 1]} : vector<16x9xf32> to vector<16x1xf32>
    %48 = vector.broadcast %47 : vector<16x1xf32> to vector<16x384xf32>
    %49 = vector.broadcast %46 : vector<1x384xf32> to vector<16x384xf32>
    %50 = arith.mulf %48, %49 : vector<16x384xf32>
    %51 = arith.addf %45, %50 : vector<16x384xf32>
    %c366_i32 = arith.constant 366 : i32
    %52 = tpu.dynamic_rotate %1 by %c366_i32 dim 1 : vector<1x384xf32>, i32 -> vector<1x384xf32>
    %53 = vector.extract_strided_slice %3 {offsets = [0, 7], sizes = [16, 1], strides = [1, 1]} : vector<16x9xf32> to vector<16x1xf32>
    %54 = vector.broadcast %53 : vector<16x1xf32> to vector<16x384xf32>
    %55 = vector.broadcast %52 : vector<1x384xf32> to vector<16x384xf32>
    %56 = arith.mulf %54, %55 : vector<16x384xf32>
    %57 = arith.addf %51, %56 : vector<16x384xf32>
    %c365_i32 = arith.constant 365 : i32
    %58 = tpu.dynamic_rotate %1 by %c365_i32 dim 1 : vector<1x384xf32>, i32 -> vector<1x384xf32>
    %59 = vector.extract_strided_slice %3 {offsets = [0, 8], sizes = [16, 1], strides = [1, 1]} : vector<16x9xf32> to vector<16x1xf32>
    %60 = vector.broadcast %59 : vector<16x1xf32> to vector<16x384xf32>
    %61 = vector.broadcast %58 : vector<1x384xf32> to vector<16x384xf32>
    %62 = arith.mulf %60, %61 : vector<16x384xf32>
    %63 = arith.addf %57, %62 : vector<16x384xf32>
    %64 = vector.broadcast %4 : vector<16x1xf32> to vector<16x384xf32>
    %65 = arith.addf %63, %64 : vector<16x384xf32>
    %cst_16 = arith.constant 0.000000e+00 : f32
    %66 = vector.broadcast %cst_16 : f32 to vector<16x384xf32>
    %67 = arith.maximumf %65, %66 : vector<16x384xf32>
    %68 = vector.broadcast %2 : vector<1x384xf32> to vector<16x384xf32>
    %69 = arith.mulf %67, %68 : vector<16x384xf32>
    %c19_i32_17 = arith.constant 19 : i32
    %70 = tpu.dynamic_rotate %69 by %c19_i32_17 dim 1 : vector<16x384xf32>, i32 -> vector<16x384xf32>
    %c18_i32_18 = arith.constant 18 : i32
    %71 = tpu.dynamic_rotate %69 by %c18_i32_18 dim 1 : vector<16x384xf32>, i32 -> vector<16x384xf32>
    %c17_i32_19 = arith.constant 17 : i32
    %72 = tpu.dynamic_rotate %69 by %c17_i32_19 dim 1 : vector<16x384xf32>, i32 -> vector<16x384xf32>
    %c1_i32_20 = arith.constant 1 : i32
    %73 = tpu.dynamic_rotate %69 by %c1_i32_20 dim 1 : vector<16x384xf32>, i32 -> vector<16x384xf32>
    %c0_i32_21 = arith.constant 0 : i32
    %74 = tpu.dynamic_rotate %69 by %c0_i32_21 dim 1 : vector<16x384xf32>, i32 -> vector<16x384xf32>
    %c383_i32_22 = arith.constant 383 : i32
    %75 = tpu.dynamic_rotate %69 by %c383_i32_22 dim 1 : vector<16x384xf32>, i32 -> vector<16x384xf32>
    %c367_i32_23 = arith.constant 367 : i32
    %76 = tpu.dynamic_rotate %69 by %c367_i32_23 dim 1 : vector<16x384xf32>, i32 -> vector<16x384xf32>
    %c366_i32_24 = arith.constant 366 : i32
    %77 = tpu.dynamic_rotate %69 by %c366_i32_24 dim 1 : vector<16x384xf32>, i32 -> vector<16x384xf32>
    %c365_i32_25 = arith.constant 365 : i32
    %78 = tpu.dynamic_rotate %69 by %c365_i32_25 dim 1 : vector<16x384xf32>, i32 -> vector<16x384xf32>
    %79 = tpu.concatenate %70, %71, %72, %73, %74, %75, %76, %77, %78 in 0 : vector<16x384xf32>, vector<16x384xf32>, vector<16x384xf32>, vector<16x384xf32>, vector<16x384xf32>, vector<16x384xf32>, vector<16x384xf32>, vector<16x384xf32>, vector<16x384xf32> -> vector<144x384xf32>
    %cst_26 = arith.constant dense<0.000000e+00> : vector<16x384xf32>
    %80 = tpu.matmul %5, %79, %cst_26 {dimension_numbers = #tpu.dot_dimension_numbers<[1], [0], [0], [1], [0, 0, 1, 1], [], []>} : vector<16x144xf32>, vector<144x384xf32>, vector<16x384xf32> -> vector<16x384xf32>
    %81 = vector.broadcast %6 : vector<16x1xf32> to vector<16x384xf32>
    %82 = arith.addf %80, %81 : vector<16x384xf32>
    %cst_27 = arith.constant 0.000000e+00 : f32
    %83 = vector.broadcast %cst_27 : f32 to vector<16x384xf32>
    %84 = arith.maximumf %82, %83 : vector<16x384xf32>
    %85 = vector.broadcast %2 : vector<1x384xf32> to vector<16x384xf32>
    %86 = arith.mulf %84, %85 : vector<16x384xf32>
    %cst_28 = arith.constant dense<0.000000e+00> : vector<9x384xf32>
    %87 = tpu.matmul %7, %86, %cst_28 {dimension_numbers = #tpu.dot_dimension_numbers<[1], [0], [0], [1], [0, 0, 1, 1], [], []>} : vector<9x16xf32>, vector<16x384xf32>, vector<9x384xf32> -> vector<9x384xf32>
    %cst_29 = arith.constant 0.000000e+00 : f32
    %88 = vector.broadcast %cst_29 : f32 to vector<1x384xf32>
    %89 = vector.extract_strided_slice %87 {offsets = [0, 0], sizes = [1, 384], strides = [1, 1]} : vector<9x384xf32> to vector<1x384xf32>
    %c19_i32_30 = arith.constant 19 : i32
    %90 = tpu.dynamic_rotate %89 by %c19_i32_30 dim 1 : vector<1x384xf32>, i32 -> vector<1x384xf32>
    %91 = arith.addf %88, %90 : vector<1x384xf32>
    %92 = vector.extract_strided_slice %87 {offsets = [1, 0], sizes = [1, 384], strides = [1, 1]} : vector<9x384xf32> to vector<1x384xf32>
    %c18_i32_31 = arith.constant 18 : i32
    %93 = tpu.dynamic_rotate %92 by %c18_i32_31 dim 1 : vector<1x384xf32>, i32 -> vector<1x384xf32>
    %94 = arith.addf %91, %93 : vector<1x384xf32>
    %95 = vector.extract_strided_slice %87 {offsets = [2, 0], sizes = [1, 384], strides = [1, 1]} : vector<9x384xf32> to vector<1x384xf32>
    %c17_i32_32 = arith.constant 17 : i32
    %96 = tpu.dynamic_rotate %95 by %c17_i32_32 dim 1 : vector<1x384xf32>, i32 -> vector<1x384xf32>
    %97 = arith.addf %94, %96 : vector<1x384xf32>
    %98 = vector.extract_strided_slice %87 {offsets = [3, 0], sizes = [1, 384], strides = [1, 1]} : vector<9x384xf32> to vector<1x384xf32>
    %c1_i32_33 = arith.constant 1 : i32
    %99 = tpu.dynamic_rotate %98 by %c1_i32_33 dim 1 : vector<1x384xf32>, i32 -> vector<1x384xf32>
    %100 = arith.addf %97, %99 : vector<1x384xf32>
    %101 = vector.extract_strided_slice %87 {offsets = [4, 0], sizes = [1, 384], strides = [1, 1]} : vector<9x384xf32> to vector<1x384xf32>
    %c0_i32_34 = arith.constant 0 : i32
    %102 = tpu.dynamic_rotate %101 by %c0_i32_34 dim 1 : vector<1x384xf32>, i32 -> vector<1x384xf32>
    %103 = arith.addf %100, %102 : vector<1x384xf32>
    %104 = vector.extract_strided_slice %87 {offsets = [5, 0], sizes = [1, 384], strides = [1, 1]} : vector<9x384xf32> to vector<1x384xf32>
    %c383_i32_35 = arith.constant 383 : i32
    %105 = tpu.dynamic_rotate %104 by %c383_i32_35 dim 1 : vector<1x384xf32>, i32 -> vector<1x384xf32>
    %106 = arith.addf %103, %105 : vector<1x384xf32>
    %107 = vector.extract_strided_slice %87 {offsets = [6, 0], sizes = [1, 384], strides = [1, 1]} : vector<9x384xf32> to vector<1x384xf32>
    %c367_i32_36 = arith.constant 367 : i32
    %108 = tpu.dynamic_rotate %107 by %c367_i32_36 dim 1 : vector<1x384xf32>, i32 -> vector<1x384xf32>
    %109 = arith.addf %106, %108 : vector<1x384xf32>
    %110 = vector.extract_strided_slice %87 {offsets = [7, 0], sizes = [1, 384], strides = [1, 1]} : vector<9x384xf32> to vector<1x384xf32>
    %c366_i32_37 = arith.constant 366 : i32
    %111 = tpu.dynamic_rotate %110 by %c366_i32_37 dim 1 : vector<1x384xf32>, i32 -> vector<1x384xf32>
    %112 = arith.addf %109, %111 : vector<1x384xf32>
    %113 = vector.extract_strided_slice %87 {offsets = [8, 0], sizes = [1, 384], strides = [1, 1]} : vector<9x384xf32> to vector<1x384xf32>
    %c365_i32_38 = arith.constant 365 : i32
    %114 = tpu.dynamic_rotate %113 by %c365_i32_38 dim 1 : vector<1x384xf32>, i32 -> vector<1x384xf32>
    %115 = arith.addf %112, %114 : vector<1x384xf32>
    %116 = vector.broadcast %8 : vector<1x1xf32> to vector<1x384xf32>
    %117 = arith.addf %115, %116 : vector<1x384xf32>
    %118 = math.tanh %117 : vector<1x384xf32>
    %cst_39 = arith.constant -1.000000e+00 : f32
    %cst_40 = arith.constant 1.000000e+00 : f32
    %119 = vector.broadcast %cst_39 : f32 to vector<1x384xf32>
    %120 = arith.maximumf %119, %118 : vector<1x384xf32>
    %121 = vector.broadcast %cst_40 : f32 to vector<1x384xf32>
    %122 = arith.minimumf %121, %120 : vector<1x384xf32>
    %c0_41 = arith.constant 0 : index
    %c0_42 = arith.constant 0 : index
    %c0_43 = arith.constant 0 : index
    %123 = vector.load %arg9[%c0_41, %c0_42, %c0_43] : memref<1x1x384xf32, #tpu.memory_space<vmem>>, vector<1x1x384xf32>
    %124 = vector.shape_cast %123 : vector<1x1x384xf32> to vector<1x384xf32>
    %125 = vector.shape_cast %122 : vector<1x384xf32> to vector<1x1x384xf32>
    tpu.vector_store %arg9[%c0_41, %c0_42, %c0_43], %125 {strides = array<i32>} : memref<1x1x384xf32, #tpu.memory_space<vmem>>, vector<1x1x384xf32>,
    return
  }
  func.func @transform_0(%arg0: i32) -> (i32, i32, i32) {
    %c0_i32 = arith.constant 0 : i32
    %c0_i32_0 = arith.constant 0 : i32
    %c0_i32_1 = arith.constant 0 : i32
    return %arg0, %c0_i32, %c0_i32_0 : i32, i32, i32
  }
  func.func @transform_1(%arg0: i32) -> (i32, i32) {
    %c0_i32 = arith.constant 0 : i32
    %c0_i32_0 = arith.constant 0 : i32
    %c0_i32_1 = arith.constant 0 : i32
    return %c0_i32, %c0_i32_0 : i32, i32
  }
  func.func @transform_2(%arg0: i32) -> (i32, i32) {
    %c0_i32 = arith.constant 0 : i32
    %c0_i32_0 = arith.constant 0 : i32
    %c0_i32_1 = arith.constant 0 : i32
    return %c0_i32, %c0_i32_0 : i32, i32
  }
  func.func @transform_3(%arg0: i32) -> (i32, i32) {
    %c0_i32 = arith.constant 0 : i32
    %c0_i32_0 = arith.constant 0 : i32
    %c0_i32_1 = arith.constant 0 : i32
    return %c0_i32, %c0_i32_0 : i32, i32
  }
  func.func @transform_4(%arg0: i32) -> (i32, i32) {
    %c0_i32 = arith.constant 0 : i32
    %c0_i32_0 = arith.constant 0 : i32
    %c0_i32_1 = arith.constant 0 : i32
    return %c0_i32, %c0_i32_0 : i32, i32
  }
  func.func @transform_5(%arg0: i32) -> (i32, i32) {
    %c0_i32 = arith.constant 0 : i32
    %c0_i32_0 = arith.constant 0 : i32
    %c0_i32_1 = arith.constant 0 : i32
    return %c0_i32, %c0_i32_0 : i32, i32
  }
  func.func @transform_6(%arg0: i32) -> (i32, i32) {
    %c0_i32 = arith.constant 0 : i32
    %c0_i32_0 = arith.constant 0 : i32
    %c0_i32_1 = arith.constant 0 : i32
    return %c0_i32, %c0_i32_0 : i32, i32
  }
  func.func @transform_7(%arg0: i32) -> (i32, i32) {
    %c0_i32 = arith.constant 0 : i32
    %c0_i32_0 = arith.constant 0 : i32
    %c0_i32_1 = arith.constant 0 : i32
    return %c0_i32, %c0_i32_0 : i32, i32
  }
  func.func @transform_8(%arg0: i32) -> (i32, i32, i32) {
    %c0_i32 = arith.constant 0 : i32
    %c0_i32_0 = arith.constant 0 : i32
    %c0_i32_1 = arith.constant 0 : i32
    return %arg0, %c0_i32, %c0_i32_0 : i32, i32, i32
  }
}

</mosaic_0001>

<bundles_post_ra>
// kernel: punchnet_forward.1
= control target key start
LH: loop header
LB: loop body
LE: loop exit
PB: predicated region body
PF: predicated region fallthrough
CT: control target
= control target key end

     0   :  { %s1831_s29 = smov 0   ;;  %s2482_s0 = inlined_call_operand.vmem [shape: f32[2,1,384], index: 0, kind: input, shape index: {}]   ;;  %s2483_s1 = inlined_call_operand.vmem [shape: f32[1,384], index: 1, kind: input, shape index: {}]   ;;  %s2484_s2 = inlined_call_operand.vmem [shape: f32[16,9], index: 2, kind: input, shape index: {}]   ;;  %s2485_s3 = inlined_call_operand.vmem [shape: f32[16,1], index: 3, kind: input, shape index: {}]   ;;  %s2486_s4 = inlined_call_operand.vmem [shape: f32[16,144], index: 4, kind: input, shape index: {}]   ;;  %s2487_s5 = inlined_call_operand.vmem [shape: f32[16,1], index: 5, kind: input, shape index: {}]   ;;  %s2488_s6 = inlined_call_operand.vmem [shape: f32[9,16], index: 6, kind: input, shape index: {}]   ;;  %s2489_s7 = inlined_call_operand.<no memory space> [shape: f32[1,1], index: 7, kind: input, shape index: {}]   ;;  %s2490_s8 = inlined_call_operand.vmem [shape: f32[2,1,384], index: 8, kind: output, shape index: {}]  }
   0x1   :  { %v13_v0 = vstv %s2489_s7 }
   0x2   :  { %14 = vst [vmem:[#allocation2] sm:$0x1] %v13_v0 }
   0x3 LB: > { %s1483_s30 = sadd.s32 4294967295, %s1761_s29   ;;  %p1487_p0 = scmp.ge.s32.totalorder %s1761_s29, 1  ;;  %s1761_s29 = sphi %s1831_s29, %s20_s29  }
   0x4   : > { %p263_p1 = scmp.lt.s32.totalorder %s1761_s29, 3 }
   0x6   : > { %p264_p2 = pnand %p1487_p0, %p263_p1 }
   0x7   : > { %v1842_v1 = vld [vmem:[%s2484_s2] sm:$0xff] (!%p264_p2)  ;;  %p295_p3 = scmp.lt.s32.totalorder (!%p264_p2), %s1483_s30, 1  ;;  %v319_v2 = vlaneseq (!%p264_p2)  ;;  %v1763_v3 = vmov (!%p264_p2), 1   ;;  %v1764_v4 = vmov (!%p264_p2), 0   ;;  %v306_v5 = vld [vmem:[%s2484_s2 + $0x8] sm:$0xff] (!%p264_p2)  ;;  %v1765_v10 = vmov (!%p264_p2), 2  }
   0x8   : > { %267 = sbr.rel (%p264_p2) target bundleno = 1044 (0x414), region = 52  ;;  %1613 = vset.pattern.permute.xlu1 (!%p264_p2), %v1763_v3  ;;  %1612 = vset.pattern.permute.xlu0 (!%p264_p2), %v1764_v4  ;;  %s1766_s16 = smov (!%p264_p2), 19   ;;  %v1767_v15 = vmov (!%p264_p2), 3   ;;  %v1770_v16 = vmov (!%p264_p2), 4   ;;  %v1772_v17 = vmov (!%p264_p2), 5   ;;  %v1774_v18 = vmov (!%p264_p2), 7  }
   0x9   : > { %391 = vperm.xlu1 (!%p264_p2), %1613, %v1842_v1   ;;  %348 = vperm.xlu0 (!%p264_p2), %1612, %v1842_v1   ;;  %v1853_v6 = vshrl.u32 (!%p264_p2), %v319_v2, 7  ;;  %s1768_s17 = smov (!%p264_p2), 18   ;;  %s1769_s18 = smov (!%p264_p2), 17   ;;  %v1775_v19 = vmov (!%p264_p2), 6   ;;  %v1777_v20 = vmov (!%p264_p2), 8   ;;  %v307_v21 = vld [vmem:[%s2485_s3] sm:$0xff] (!%p264_p2) }
   0xa   : > { %s1771_s19 = smov (!%p264_p2), 1   ;;  %s1773_s20 = smov (!%p264_p2), 127   ;;  %v308_v22 = vld [vmem:[%s2485_s3 + $0x8] sm:$0xff] (!%p264_p2)  ;;  %v1953_v34 = vand.u32 (!%p264_p2), 127, %v319_v2  ;;  %vm904_vm8 = vcmask (!%p264_p2), 130048   ;;  %vm1427_vm9 = vcmp.lt.s32.totalorder (!%p264_p2), %v319_v2, 384 }
   0xb   : > { %v1862_v7 = vsub.s32 (!%p264_p2), 0, %v1853_v6  ;;  %v325_v8 = vsub.s32 (!%p264_p2), 1, %v1853_v6  ;;  %v329_v13 = vsub.s32 (!%p264_p2), 2, %v1853_v6  ;;  %s1776_s21 = smov (!%p264_p2), 111   ;;  %s1778_s22 = smov (!%p264_p2), 110  }
   0xc   : > { %s1779_s23 = smov (!%p264_p2), 109   ;;  %vm386_vm0 = vcmp.lt.s32.totalorder (!%p264_p2), %v1953_v34, 18  ;;  %vm342_vm1 = vcmp.lt.s32.totalorder (!%p264_p2), %v1953_v34, 19  ;;  %vm428_vm2 = vcmp.lt.s32.totalorder (!%p264_p2), %v1953_v34, 17  ;;  %vm470_vm3 = vcmp.lt.s32.totalorder (!%p264_p2), %v1953_v34, 1 }
   0xd   : > { %395 = vperm.xlu1 (!%p264_p2), %1613, %v306_v5   ;;  %353 = vperm.xlu0 (!%p264_p2), %1612, %v306_v5   ;;  %vm544_vm4 = vcmp.lt.s32.totalorder (!%p264_p2), %v1953_v34, 127  ;;  %vm586_vm5 = vcmp.lt.s32.totalorder (!%p264_p2), %v1953_v34, 111  ;;  %vm628_vm6 = vcmp.lt.s32.totalorder (!%p264_p2), %v1953_v34, 110  ;;  %vm670_vm7 = vcmp.lt.s32.totalorder (!%p264_p2), %v1953_v34, 109 }
   0xf   : > { %s2492_s30 = smov (!%p295_p3, %s1483_s30), 1 }
  0x10   : > { %s1583_s12 = smul.u32 3, %s2492_s30 }
  0x11   : > { %1615 = vset.pattern.permute.xlu1 %v1765_v10  ;;  %1614 = vset.pattern.permute.xlu0 %v1765_v10 }
  0x12   : > { %s298_s15 = scalar_lea.vmem %s2482_s0, %s1583_s12  ;;  %437 = vperm.xlu1 %1615, %v306_v5   ;;  %433 = vperm.xlu0 %1614, %v1842_v1  }
  0x13   : > { %v303_v9 = vld [vmem:[%s298_s15] sm:$0x7] }
  0x14   : > { %v1868_v11 = vrot.slane %v303_v9, %v325_v8  ;;  %v1871_v12 = vrot.slane %v303_v9, %v1862_v7  ;;  %v1880_v14 = vrot.slane %v303_v9, %v329_v13 }
  0x16   : > { %336 = vrot.lane.b32.xlu0 %v1868_v11, %s1766_s16  ;;  %334 = vrot.lane.b32.xlu1 %v1871_v12, %s1766_s16 }
  0x17   : > { %1616 = vset.pattern.permute.xlu1 %v1767_v15  ;;  %1617 = vset.pattern.permute.xlu0 %v1767_v15 }
  0x1a   : > { %380 = vrot.lane.b32.xlu0 %v1871_v12, %s1768_s17  ;;  %338 = vrot.lane.b32.xlu1 %v1880_v14, %s1766_s16 }
  0x1e   : > { %384 = vrot.lane.b32.xlu0 %v1880_v14, %s1768_s17  ;;  %382 = vrot.lane.b32.xlu1 %v1868_v11, %s1768_s17 }
  0x22   : > { %479 = vperm.xlu0 %1617, %v306_v5   ;;  %475 = vperm.xlu1 %1616, %v1842_v1  }
  0x26   : > { %426 = vrot.lane.b32.xlu0 %v1880_v14, %s1769_s18  ;;  %422 = vrot.lane.b32.xlu1 %v1871_v12, %s1769_s18 }
  0x27   : > { %1619 = vset.pattern.permute.xlu0 %v1770_v16  ;;  %1618 = vset.pattern.permute.xlu1 %v1770_v16  ;;  %v2012_v16 = vrot.slane %v1868_v11, %v1862_v7 }
  0x2a   : > { %511 = vperm.xlu0 %1619, %v306_v5   ;;  %424 = vrot.lane.b32.xlu1 %v1868_v11, %s1769_s18 }
  0x2e   : > { %468 = vrot.lane.b32.xlu0 %v1880_v14, %s1771_s19  ;;  %507 = vperm.xlu1 %1618, %v1842_v1  }
  0x2f   : > { %1621 = vset.pattern.permute.xlu0 %v1772_v17 }
  0x32   : > { %553 = vperm.xlu0 %1621, %v306_v5   ;;  %464 = vrot.lane.b32.xlu1 %v1871_v12, %s1771_s19 }
  0x33   : > { %1620 = vset.pattern.permute.xlu1 %v1772_v17  ;;  %v2016_v17 = vrot.slane %v1880_v14, %v1862_v7 }
  0x36   : > { %466 = vrot.lane.b32.xlu1 %v1868_v11, %s1771_s19  ;;  %538 = vrot.lane.b32.xlu0 %v1871_v12, %s1773_s20 }
  0x37   : > { %1624 = vset.pattern.permute.xlu0 %v1774_v18 }
  0x3a   : > { %549 = vperm.xlu1 %1620, %v1842_v1   ;;  %542 = vrot.lane.b32.xlu0 %v1880_v14, %s1773_s20 }
  0x3e   : > { %1622 = vset.pattern.permute.xlu1 %v1775_v19  ;;  %637 = vperm.xlu0 %1624, %v306_v5  }
  0x3f   : > { %591 = vperm.xlu1 %1622, %v1842_v1  }
  0x42   : > { %584 = vrot.lane.b32.xlu0 %v1880_v14, %s1776_s21 }
  0x43   : > { %595 = vperm.xlu1 %1622, %v306_v5   ;;  %1626 = vset.pattern.permute.xlu0 %v1777_v20 }
  0x46   : > { %679 = vperm.xlu0 %1626, %v306_v5  }
  0x47   : > { %540 = vrot.lane.b32.xlu1 %v1868_v11, %s1773_s20 }
  0x48   : > { %1623 = vset.pattern.permute.xlu1 %v1774_v18 }
  0x4a   : > { %626 = vrot.lane.b32.xlu0 %v1880_v14, %s1778_s22 }
  0x4b   : > { %633 = vperm.xlu1 %1623, %v1842_v1   ;;  %1627 = vset.pattern.permute.xlu0 %v1764_v4 }
  0x4e   : > { %666 = vrot.lane.b32.xlu0 %v1868_v11, %s1779_s23 }
  0x4f   : > { %580 = vrot.lane.b32.xlu1 %v1871_v12, %s1776_s21 }
  0x50   : > { %1625 = vset.pattern.permute.xlu1 %v1777_v20  ;;  %v517_v20 = vrot.slane %v1871_v12, %v1862_v7 }
  0x52   : > { %708 = vperm.xlu0 %1627, %v307_v21  }
  0x53   : > { %582 = vrot.lane.b32.xlu1 %v1868_v11, %s1776_s21 }
  0x57   : > { %675 = vperm.xlu1 %1625, %v1842_v1  }
  0x5b   : > { %622 = vrot.lane.b32.xlu1 %v1871_v12, %s1778_s22 }
  0x5c   : > { %1628 = vset.pattern.permute.xlu1 %v1764_v4 }
  0x5f   : > { %624 = vrot.lane.b32.xlu1 %v1868_v11, %s1778_s22 }
  0x63   : > { %664 = vrot.lane.b32.xlu1 %v1871_v12, %s1779_s23 }
  0x67   : > { %668 = vrot.lane.b32.xlu1 %v1880_v14, %s1779_s23 }
  0x6b   : > { %713 = vperm.xlu1 %1628, %v308_v22  }
  0x88   : > { %v1940_v23 = vpop.permute.xlu1 %391  ;;  %v1942_v24 = vpop.permute.xlu0 %348 }
  0x8c   : > { %v1944_v25 = vpop.permute.xlu1 %395  ;;  %v1946_v26 = vpop.permute.xlu0 %353 }
  0x91   : > { %v1948_v27 = vpop.permute.xlu1 %437  ;;  %v1950_v28 = vpop.permute.xlu0 %433 }
  0x95   : > { %v337_v29 = vpop.permute.xlu0 %336  ;;  %v335_v30 = vpop.permute.xlu1 %334 }
  0x96   : > { %v344_v39 = vsel %vm342_vm1, %v335_v30, %v337_v29 }
  0x97   : > { %v363_v42 = vrot.slane %v344_v39, %v1862_v7 }
  0x99   : > { %v381_v31 = vpop.permute.xlu0 %380  ;;  %v339_v32 = vpop.permute.xlu1 %338  ;;  %v372_v47 = vmul.f32 %v363_v42, %v1946_v26 }
  0x9a   : > { %v345_v63 = vsel %vm342_vm1, %v339_v32, %v335_v30  ;;  %v343_v3 = vsel %vm342_vm1, %v337_v29, %v339_v32 }
  0x9b   : > { %v359_v5 = vrot.slane %v345_v63, %v1862_v7  ;;  %v367_v18 = vrot.slane %v343_v3, %v1862_v7 }
  0x9d   : > { %v383_v33 = vpop.permute.xlu1 %382  ;;  %v385_v35 = vpop.permute.xlu0 %384  ;;  %v368_v30 = vmul.f32 %v359_v5, %v1942_v24 }
  0x9e   : > { %v388_v37 = vsel %vm386_vm0, %v381_v31, %v383_v33  ;;  %v389_v62 = vsel %vm386_vm0, %v385_v35, %v381_v31  ;;  %v387_v0 = vsel %vm386_vm0, %v383_v33, %v385_v35  ;;  %v371_v31 = vmul.f32 %v359_v5, %v1946_v26 }
  0x9f   : > { %v405_v41 = vrot.slane %v388_v37, %v1862_v7  ;;  %v401_v4 = vrot.slane %v389_v62, %v1862_v7  ;;  %v409_v9 = vrot.slane %v387_v0, %v1862_v7 }
  0xa1   : > { %v1956_v36 = vpop.permute.xlu1 %475  ;;  %v1961_v38 = vpop.permute.xlu0 %479  ;;  %v414_v44 = vmul.f32 %v405_v41, %v1944_v25  ;;  %v410_v11 = vmul.f32 %v401_v4, %v1940_v23  ;;  %v413_v14 = vmul.f32 %v401_v4, %v1944_v25  ;;  %v411_v32 = vmul.f32 %v405_v41, %v1940_v23 }
  0xa2   : > { %v415_v12 = vmul.f32 %v409_v9, %v1944_v25  ;;  %v412_v41 = vmul.f32 %v409_v9, %v1940_v23 }
  0xa3   : > { %v420_v50 = vadd.f32 %v414_v44, %v372_v47  ;;  %v370_v44 = vmul.f32 %v367_v18, %v1942_v24  ;;  %v419_v47 = vadd.f32 %v413_v14, %v371_v31 }
  0xa5   : > { %v423_v40 = vpop.permute.xlu1 %422  ;;  %v427_v45 = vpop.permute.xlu0 %426  ;;  %v418_v63 = vadd.f32 %v412_v41, %v370_v44 }
  0xa6   : > { %v431_v19 = vsel %vm428_vm2, %v427_v45, %v423_v40 }
  0xa7   : > { %v443_v35 = vrot.slane %v431_v19, %v1862_v7 }
  0xa9   : > { %v425_v43 = vpop.permute.xlu1 %424  ;;  %v1979_v52 = vpop.permute.xlu0 %511  ;;  %v455_v23 = vmul.f32 %v443_v35, %v1948_v27 }
  0xaa   : > { %v430_v46 = vsel %vm428_vm2, %v423_v40, %v425_v43  ;;  %v429_v10 = vsel %vm428_vm2, %v425_v43, %v427_v45  ;;  %v369_v43 = vmul.f32 %v363_v42, %v1942_v24  ;;  %v373_v45 = vmul.f32 %v367_v18, %v1946_v26 }
  0xab   : > { %v1973_v48 = vrot.slane %v430_v46, %v1862_v7  ;;  %v451_v29 = vrot.slane %v429_v10, %v1862_v7  ;;  %v416_v46 = vadd.f32 %v410_v11, %v368_v30  ;;  %v452_v24 = vmul.f32 %v443_v35, %v1950_v28 }
  0xac   : > { %v529_v26 = vmul.f32 %v517_v20, %v1979_v52  ;;  %v530_v9 = vmul.f32 %v2012_v16, %v1979_v52  ;;  %v461_v14 = vadd.f32 %v455_v23, %v419_v47 }
  0xad   : > { %v1975_v49 = vpop.permute.xlu1 %507  ;;  %v456_v51 = vmul.f32 %v1973_v48, %v1948_v27  ;;  %v469_v56 = vpop.permute.xlu0 %468  ;;  %v453_v0 = vmul.f32 %v1973_v48, %v1950_v28  ;;  %v458_v11 = vadd.f32 %v452_v24, %v416_v46 }
  0xaf   : > { %v1981_v53 = vadd.f32 %v456_v51, %v420_v50  ;;  %v457_v50 = vmul.f32 %v451_v29, %v1948_v27  ;;  %v417_v51 = vadd.f32 %v411_v32, %v369_v43  ;;  %v531_v27 = vmul.f32 %v2016_v17, %v1979_v52 }
  0xb1   : > { %v465_v54 = vpop.permute.xlu1 %464  ;;  %v1985_v58 = vpop.permute.xlu0 %553  ;;  %v459_v31 = vadd.f32 %v453_v0, %v417_v51 }
  0xb2   : > { %v473_v37 = vsel %vm470_vm3, %v469_v56, %v465_v54 }
  0xb5   : > { %v467_v55 = vpop.permute.xlu1 %466  ;;  %v1989_v60 = vpop.permute.xlu0 %538 }
  0xb6   : > { %v471_v21 = vsel %vm470_vm3, %v467_v55, %v469_v56  ;;  %v472_v39 = vsel %vm470_vm3, %v465_v54, %v467_v55  ;;  %v454_v54 = vmul.f32 %v451_v29, %v1950_v28  ;;  %v485_v55 = vrot.slane %v473_v37, %v1862_v7 }
  0xb7   : > { %v493_v40 = vrot.slane %v471_v21, %v1862_v7  ;;  %v489_v42 = vrot.slane %v472_v39, %v1862_v7  ;;  %v421_v56 = vadd.f32 %v415_v12, %v373_v45  ;;  %v527_v39 = vmul.f32 %v2012_v16, %v1975_v49 }
  0xb8   : > { %v460_v19 = vadd.f32 %v454_v54, %v418_v63  ;;  %v494_v28 = vmul.f32 %v485_v55, %v1956_v36  ;;  %v497_v48 = vmul.f32 %v485_v55, %v1961_v38 }
  0xb9   : > { %v1983_v57 = vpop.permute.xlu1 %549  ;;  %v2008_v15 = vpop.permute.xlu0 %542  ;;  %v499_v62 = vmul.f32 %v493_v40, %v1961_v38  ;;  %v496_v3 = vmul.f32 %v493_v40, %v1956_v36  ;;  %v463_v10 = vadd.f32 %v457_v50, %v421_v56  ;;  %v495_v21 = vmul.f32 %v489_v42, %v1956_v36 }
  0xba   : > { %v547_v18 = vsel %vm544_vm4, %v2008_v15, %v1989_v60  ;;  %v498_v29 = vmul.f32 %v489_v42, %v1961_v38  ;;  %v526_v36 = vmul.f32 %v517_v20, %v1975_v49  ;;  %v528_v38 = vmul.f32 %v2016_v17, %v1975_v49 }
  0xbb   : > { %v505_v30 = vadd.f32 %v499_v62, %v463_v10  ;;  %v502_v52 = vadd.f32 %v496_v3, %v460_v19  ;;  %v567_v32 = vrot.slane %v547_v18, %v1862_v7  ;;  %v500_v43 = vadd.f32 %v494_v28, %v458_v11 }
  0xbc   : > { %v503_v44 = vadd.f32 %v497_v48, %v461_v14  ;;  %v504_v45 = vadd.f32 %v498_v29, %v1981_v53 }
  0xbd   : > { %v2036_v33 = vpop.permute.xlu0 %637  ;;  %v537_v20 = vadd.f32 %v531_v27, %v505_v30  ;;  %v573_v49 = vmul.f32 %v567_v32, %v1985_v58  ;;  %v534_v17 = vadd.f32 %v528_v38, %v502_v52  ;;  %v570_v47 = vmul.f32 %v567_v32, %v1983_v57 }
  0xbe   : > { %v1987_v59 = vpop.permute.xlu1 %591  ;;  %v532_v54 = vadd.f32 %v526_v36, %v500_v43  ;;  %v535_v55 = vadd.f32 %v529_v26, %v503_v44  ;;  %v536_v56 = vadd.f32 %v530_v9, %v504_v45 }
  0xbf   : > { %v579_v63 = vadd.f32 %v573_v49, %v537_v20  ;;  %v576_v0 = vadd.f32 %v570_v47, %v534_v17 }
  0xc1   : > { %v585_v4 = vpop.permute.xlu0 %584 }
  0xc2   : > { %v1991_v61 = vpop.permute.xlu1 %595 }
  0xc5   : > { %v2078_v35 = vpop.permute.xlu0 %679 }
  0xc6   : > { %v1999_v1 = vpop.permute.xlu1 %540 }
  0xc7   : > { %v546_v12 = vsel %vm544_vm4, %v1989_v60, %v1999_v1  ;;  %v545_v40 = vsel %vm544_vm4, %v1999_v1, %v2008_v15  ;;  %v501_v60 = vadd.f32 %v495_v21, %v459_v31 }
  0xc8   : > { %v559_v46 = vrot.slane %v546_v12, %v1862_v7  ;;  %v563_v1 = vrot.slane %v545_v40, %v1862_v7 }
  0xc9   : > { %v533_v53 = vadd.f32 %v527_v39, %v501_v60  ;;  %v627_v42 = vpop.permute.xlu0 %626 }
  0xca   : > { %v2026_v22 = vpop.permute.xlu1 %633  ;;  %v568_v24 = vmul.f32 %v559_v46, %v1983_v57  ;;  %v571_v23 = vmul.f32 %v559_v46, %v1985_v58  ;;  %v569_v3 = vmul.f32 %v563_v1, %v1983_v57  ;;  %v572_v26 = vmul.f32 %v563_v1, %v1985_v58 }
  0xcc   : > { %v574_v48 = vadd.f32 %v568_v24, %v532_v54  ;;  %v577_v21 = vadd.f32 %v571_v23, %v535_v55  ;;  %v575_v12 = vadd.f32 %v569_v3, %v533_v53  ;;  %v578_v36 = vadd.f32 %v572_v26, %v536_v56  ;;  %v304_v54 = vld [vmem:[%s2483_s1] sm:$0x7] }
  0xcd   : > { %v667_v30 = vpop.permute.xlu0 %666 }
  0xce   : > { %v581_v25 = vpop.permute.xlu1 %580 }
  0xcf   : > { %v589_v41 = vsel %vm586_vm5, %v585_v4, %v581_v25 }
  0xd0   : > { %v609_v50 = vrot.slane %v589_v41, %v1862_v7 }
  0xd1   : > { %v709_v55 = vpop.permute.xlu0 %708 }
  0xd2   : > { %v583_v5 = vpop.permute.xlu1 %582  ;;  %v612_v27 = vmul.f32 %v609_v50, %v1987_v59  ;;  %v615_v58 = vmul.f32 %v609_v50, %v1991_v61 }
  0xd3   : > { %v588_v16 = vsel %vm586_vm5, %v581_v25, %v583_v5  ;;  %v587_v51 = vsel %vm586_vm5, %v583_v5, %v585_v4 }
  0xd4   : > { %v601_v25 = vrot.slane %v588_v16, %v1862_v7  ;;  %v605_v4 = vrot.slane %v587_v51, %v1862_v7  ;;  %v618_v39 = vadd.f32 %v612_v27, %v576_v0  ;;  %v621_v60 = vadd.f32 %v615_v58, %v579_v63 }
  0xd6   : > { %v2080_v37 = vpop.permute.xlu1 %675  ;;  %v610_v18 = vmul.f32 %v601_v25, %v1987_v59  ;;  %v613_v19 = vmul.f32 %v601_v25, %v1991_v61  ;;  %v611_v14 = vmul.f32 %v605_v4, %v1987_v59  ;;  %v614_v29 = vmul.f32 %v605_v4, %v1991_v61 }
  0xd7   : > { %v2150_v4 = vrot.slane %v304_v54, %v1862_v7 }
  0xd8   : > { %v616_v40 = vadd.f32 %v610_v18, %v574_v48  ;;  %v619_v43 = vadd.f32 %v613_v19, %v577_v21  ;;  %v617_v20 = vadd.f32 %v611_v14, %v575_v12  ;;  %v620_v46 = vadd.f32 %v614_v29, %v578_v36 }
  0xd9   : > { %v2154_v19 = vrot.slane %v304_v54, %v325_v8 }
  0xda   : > { %v623_v15 = vpop.permute.xlu1 %622 }
  0xdb   : > { %v631_v62 = vsel %vm628_vm6, %v627_v42, %v623_v15 }
  0xdc   : > { %v651_v28 = vrot.slane %v631_v62, %v1862_v7 }
  0xde   : > { %v625_v5 = vpop.permute.xlu1 %624  ;;  %v654_v44 = vmul.f32 %v651_v28, %v2026_v22  ;;  %v657_v59 = vmul.f32 %v651_v28, %v2036_v33 }
  0xdf   : > { %v629_v9 = vsel %vm628_vm6, %v625_v5, %v627_v42  ;;  %v630_v10 = vsel %vm628_vm6, %v623_v15, %v625_v5 }
  0xe0   : > { %v643_v57 = vrot.slane %v630_v10, %v1862_v7  ;;  %v647_v11 = vrot.slane %v629_v9, %v1862_v7  ;;  %v663_v51 = vadd.f32 %v657_v59, %v621_v60  ;;  %v310_v60 = vld [vmem:[%s2486_s4 + $0x8] sm:$0xff] }
  0xe1   : > { %1488 = vmatprep.mubr.msk.f32.mxu0 %vm904_vm8, %v310_v60  ;;  %1490 = vmatprep.mubr.msk.f32.mxu1 %vm904_vm8, %v310_v60 }
  0xe2   : > { %v652_v31 = vmul.f32 %v643_v57, %v2026_v22  ;;  %v655_v52 = vmul.f32 %v643_v57, %v2036_v33  ;;  %v665_v32 = vpop.permute.xlu1 %664  ;;  %v653_v61 = vmul.f32 %v647_v11, %v2026_v22  ;;  %v656_v41 = vmul.f32 %v647_v11, %v2036_v33 }
  0xe3   : > { %v672_v38 = vsel %vm670_vm7, %v665_v32, %v667_v30  ;;  %v660_v22 = vadd.f32 %v654_v44, %v618_v39 }
  0xe4   : > { %v685_v45 = vrot.slane %v672_v38, %v1862_v7  ;;  %v658_v16 = vadd.f32 %v652_v31, %v616_v40  ;;  %v661_v49 = vadd.f32 %v655_v52, %v619_v43  ;;  %v659_v25 = vadd.f32 %v653_v61, %v617_v20  ;;  %v313_v61 = vld [vmem:[%s2487_s5] sm:$0xff] }
  0xe5   : > { %v662_v42 = vadd.f32 %v656_v41, %v620_v46  ;;  %v1780_v52 = vmov 0.0|0.0   ;;  %v314_v41 = vld [vmem:[%s2487_s5 + $0x8] sm:$0xff] }
  0xe6   : > { %v669_v17 = vpop.permute.xlu1 %668  ;;  %v694_v47 = vmul.f32 %v685_v45, %v2080_v37  ;;  %v697_v1 = vmul.f32 %v685_v45, %v2078_v35  ;;  %1548 = vmatprep.subr.bf16.mxu1 %v1780_v52  ;;  %v317_v45 = vld [vmem:[#allocation2] sm:$0x1] }
  0xe7   : > { %v671_v15 = vsel %vm670_vm7, %v667_v30, %v669_v17  ;;  %v673_v50 = vsel %vm670_vm7, %v669_v17, %v665_v32 }
  0xe8   : > { %v689_v33 = vrot.slane %v671_v15, %v1862_v7  ;;  %v693_v53 = vrot.slane %v673_v50, %v1862_v7  ;;  %v700_v56 = vadd.f32 %v694_v47, %v658_v16  ;;  %v703_v24 = vadd.f32 %v697_v1, %v661_v49 }
  0xea   : > { %v695_v23 = vmul.f32 %v689_v33, %v2080_v37  ;;  %v696_v62 = vmul.f32 %v693_v53, %v2080_v37  ;;  %v698_v63 = vmul.f32 %v689_v33, %v2078_v35  ;;  %v699_v0 = vmul.f32 %v693_v53, %v2078_v35  ;;  %v714_v3 = vpop.permute.xlu1 %713 }
  0xeb   : > { %v716_v5 = vadd.f32 %v709_v55, %v700_v56  ;;  %v719_v26 = vadd.f32 %v714_v3, %v703_v24  ;;  %v2158_v37 = vrot.slane %v304_v54, %v329_v13 }
  0xec   : > { %v701_v27 = vadd.f32 %v695_v23, %v659_v25  ;;  %v702_v9 = vadd.f32 %v696_v62, %v660_v22  ;;  %v704_v10 = vadd.f32 %v698_v63, %v662_v42  ;;  %v705_v18 = vadd.f32 %v699_v0, %v663_v51 }
  0xed   : > { %v722_v28 = vmax.f32 %v716_v5, 0.0  ;;  %v725_v35 = vmax.f32 %v719_v26, 0.0 }
  0xee   : > { %v717_v57 = vadd.f32 %v709_v55, %v701_v27  ;;  %v718_v48 = vadd.f32 %v709_v55, %v702_v9  ;;  %v720_v21 = vadd.f32 %v714_v3, %v704_v10  ;;  %v721_v58 = vadd.f32 %v714_v3, %v705_v18 }
  0xef   : > { %v2161_v11 = vmul.f32 %v2150_v4, %v722_v28  ;;  %v2164_v14 = vmul.f32 %v2150_v4, %v725_v35 }
  0xf0   : > { %v723_v29 = vmax.f32 %v717_v57, 0.0  ;;  %v724_v30 = vmax.f32 %v718_v48, 0.0  ;;  %v726_v8 = vmax.f32 %v720_v21, 0.0  ;;  %v727_v31 = vmax.f32 %v721_v58, 0.0 }
  0xf1   : > { %v1629_v13 = vpack.i.bf16 %v2164_v14, %v2161_v11  ;;  %v1530_v44 = vpack.c.bf16 %v2164_v14, %v2161_v11 }
  0xf2   : > { %v2170_v32 = vmul.f32 %v2154_v19, %v723_v29  ;;  %v2173_v12 = vmul.f32 %v2158_v37, %v724_v30  ;;  %v2176_v36 = vmul.f32 %v2154_v19, %v726_v8  ;;  %v2179_v39 = vmul.f32 %v2158_v37, %v727_v31 }
  0xf3   : > { %1630 = vrot.lane.b32.xlu1 %v1629_v13, %s1766_s16 }
  0xf4   : > { %v1634_v38 = vpack.i.bf16 %v2176_v36, %v2170_v32  ;;  %v1639_v40 = vpack.i.bf16 %v2179_v39, %v2173_v12  ;;  %v1528_v43 = vpack.c.bf16 %v2176_v36, %v2170_v32  ;;  %v1561_v59 = vpack.c.bf16 %v2179_v39, %v2173_v12 }
  0xf6   : > { %1635 = vrot.lane.b32.xlu0 %v1634_v38, %s1766_s16 }
  0xf7   : > { %1640 = vrot.lane.b32.xlu1 %v1639_v40, %s1766_s16 }
  0xfa   : > { %1645 = vrot.lane.b32.xlu0 %v1629_v13, %s1768_s17 }
  0xfb   : > { %1650 = vrot.lane.b32.xlu1 %v1634_v38, %s1768_s17 }
  0xfe   : > { %1655 = vrot.lane.b32.xlu0 %v1639_v40, %s1768_s17 }
  0xff   : > { %1660 = vrot.lane.b32.xlu1 %v1629_v13, %s1769_s18 }
 0x102   : > { %1665 = vrot.lane.b32.xlu0 %v1634_v38, %s1769_s18 }
 0x103   : > { %1670 = vrot.lane.b32.xlu1 %v1639_v40, %s1769_s18 }
 0x106   : > { %1675 = vrot.lane.b32.xlu0 %v1629_v13, %s1771_s19 }
 0x107   : > { %1680 = vrot.lane.b32.xlu1 %v1634_v38, %s1771_s19 }
 0x10a   : > { %1685 = vrot.lane.b32.xlu0 %v1639_v40, %s1771_s19 }
 0x10b   : > { %1690 = vrot.lane.b32.xlu1 %v1634_v38, %s1773_s20 }
 0x10e   : > { %1695 = vrot.lane.b32.xlu0 %v1639_v40, %s1773_s20 }
 0x10f   : > { %1700 = vrot.lane.b32.xlu1 %v1629_v13, %s1773_s20 }
 0x112   : > { %1705 = vrot.lane.b32.xlu0 %v1634_v38, %s1776_s21 }
 0x113   : > { %1710 = vrot.lane.b32.xlu1 %v1639_v40, %s1776_s21 }
 0x116   : > { %1715 = vrot.lane.b32.xlu0 %v1629_v13, %s1776_s21 }
 0x117   : > { %1720 = vrot.lane.b32.xlu1 %v1634_v38, %s1778_s22 }
 0x11a   : > { %1725 = vrot.lane.b32.xlu0 %v1639_v40, %s1778_s22 }
 0x11b   : > { %1730 = vrot.lane.b32.xlu1 %v1629_v13, %s1778_s22 }
 0x11e   : > { %1735 = vrot.lane.b32.xlu0 %v1634_v38, %s1779_s23 }
 0x11f   : > { %1740 = vrot.lane.b32.xlu1 %v1639_v40, %s1779_s23 }
 0x122   : > { %1745 = vrot.lane.b32.xlu0 %v1629_v13, %s1779_s23 }
 0x123   : > { %896 = vperm.xlu1 %1628, %v313_v61  }
 0x126   : > { %901 = vperm.xlu0 %1627, %v314_v41  }
 0x12a   : > { %1379 = vperm.xlu0 %1627, %v317_v45  }
 0x165   : > { %v1631_v20 = vpop.permute.xlu1 %1630 }
 0x166   : > { %v1633_v16 = vunpack.i.h.bf16 %v1631_v20  ;;  %v1632_v49 = vunpack.i.l.bf16 %v1631_v20 }
 0x168   : > { %v1636_v46 = vpop.permute.xlu0 %1635 }
 0x169   : > { %v1638_v17 = vunpack.i.h.bf16 %v1636_v46  ;;  %v1637_v47 = vunpack.i.l.bf16 %v1636_v46  ;;  %v1641_v1 = vpop.permute.xlu1 %1640 }
 0x16a   : > { %v1643_v15 = vunpack.i.h.bf16 %v1641_v1  ;;  %v1642_v50 = vunpack.i.l.bf16 %v1641_v1 }
 0x16b   : > { %v764_v22 = vsel %vm342_vm1, %v1632_v49, %v1637_v47  ;;  %v765_v51 = vsel %vm342_vm1, %v1633_v16, %v1638_v17 }
 0x16c   : > { %v1646_v33 = vpop.permute.xlu0 %1645  ;;  %v1512_v53 = vpack.c.bf16 %v765_v51, %v764_v22  ;;  %v766_v54 = vsel %vm342_vm1, %v1642_v50, %v1632_v49  ;;  %v767_v55 = vsel %vm342_vm1, %v1643_v15, %v1633_v16  ;;  %v762_v25 = vsel %vm342_vm1, %v1637_v47, %v1642_v50 }
 0x16d   : > { %v1648_v42 = vunpack.i.h.bf16 %v1646_v33  ;;  %v1647_v56 = vunpack.i.l.bf16 %v1646_v33  ;;  %v1651_v24 = vpop.permute.xlu1 %1650  ;;  %v1514_v23 = vpack.c.bf16 %v767_v55, %v766_v54  ;;  %v763_v62 = vsel %vm342_vm1, %v1638_v17, %v1643_v15 }
 0x16e   : > { %v1653_v63 = vunpack.i.h.bf16 %v1651_v24  ;;  %v1652_v0 = vunpack.i.l.bf16 %v1651_v24  ;;  %1513 = vmatprep.subr.bf16.mxu0 %v1512_v53  ;;  %v1549_v3 = vpack.c.bf16 %v763_v62, %v762_v25 }
 0x16f   : > { %1515 = vmatpush1.bf16.msra.mxu0 %v1514_v23 }
 0x170   : > { %1550 = vmatpush1.bf16.msra.mxu1 %v1549_v3  ;;  %v1656_v5 = vpop.permute.xlu0 %1655  ;;  %v782_v26 = vsel %vm386_vm0, %v1647_v56, %v1652_v0  ;;  %v783_v27 = vsel %vm386_vm0, %v1648_v42, %v1653_v63 }
 0x171   : > { %v1658_v9 = vunpack.i.h.bf16 %v1656_v5  ;;  %v1657_v10 = vunpack.i.l.bf16 %v1656_v5  ;;  %v1661_v18 = vpop.permute.xlu1 %1660  ;;  %v1516_v28 = vpack.c.bf16 %v783_v27, %v782_v26  ;;  %1551 = vmatprep.subr.bf16.mxu1 %v1780_v52 }
 0x172   : > { %v1663_v8 = vunpack.i.h.bf16 %v1661_v18  ;;  %v1662_v31 = vunpack.i.l.bf16 %v1661_v18 }
 0x173   : > { %1517 = vmatprep.subr.bf16.mxu0 %v1516_v28  ;;  %v784_v35 = vsel %vm386_vm0, %v1657_v10, %v1647_v56  ;;  %v785_v57 = vsel %vm386_vm0, %v1658_v9, %v1648_v42  ;;  %v780_v48 = vsel %vm386_vm0, %v1652_v0, %v1657_v10  ;;  %v781_v21 = vsel %vm386_vm0, %v1653_v63, %v1658_v9 }
 0x174   : > { %v1666_v58 = vpop.permute.xlu0 %1665  ;;  %v1518_v29 = vpack.c.bf16 %v785_v57, %v784_v35  ;;  %v1552_v30 = vpack.c.bf16 %v781_v21, %v780_v48 }
 0x175   : > { %v1668_v13 = vunpack.i.h.bf16 %v1666_v58  ;;  %v1667_v38 = vunpack.i.l.bf16 %v1666_v58  ;;  %v1671_v40 = vpop.permute.xlu1 %1670 }
 0x176   : > { %v1673_v60 = vunpack.i.h.bf16 %v1671_v40  ;;  %v1672_v61 = vunpack.i.l.bf16 %v1671_v40  ;;  %1519 = vmatpush1.bf16.msra.mxu0 %v1518_v29  ;;  %1553 = vmatpush1.bf16.msra.mxu1 %v1552_v30 }
 0x177   : > { %v800_v41 = vsel %vm428_vm2, %v1662_v31, %v1667_v38  ;;  %v801_v45 = vsel %vm428_vm2, %v1663_v8, %v1668_v13  ;;  %1554 = vmatprep.subr.bf16.mxu1 %v1780_v52 }
 0x178   : > { %v1676_v20 = vpop.permute.xlu0 %1675  ;;  %v1520_v46 = vpack.c.bf16 %v801_v45, %v800_v41  ;;  %v802_v16 = vsel %vm428_vm2, %v1672_v61, %v1662_v31  ;;  %v803_v49 = vsel %vm428_vm2, %v1673_v60, %v1663_v8  ;;  %v798_v17 = vsel %vm428_vm2, %v1667_v38, %v1672_v61 }
 0x179   : > { %v1678_v47 = vunpack.i.h.bf16 %v1676_v20  ;;  %v1677_v1 = vunpack.i.l.bf16 %v1676_v20  ;;  %v1681_v15 = vpop.permute.xlu1 %1680  ;;  %v1522_v50 = vpack.c.bf16 %v803_v49, %v802_v16  ;;  %v799_v22 = vsel %vm428_vm2, %v1668_v13, %v1673_v60 }
 0x17a   : > { %v1683_v51 = vunpack.i.h.bf16 %v1681_v15  ;;  %v1682_v33 = vunpack.i.l.bf16 %v1681_v15  ;;  %1521 = vmatprep.subr.bf16.mxu0 %v1520_v46  ;;  %v1555_v53 = vpack.c.bf16 %v799_v22, %v798_v17 }
 0x17b   : > { %1523 = vmatpush1.bf16.msra.mxu0 %v1522_v50 }
 0x17c   : > { %1556 = vmatpush1.bf16.msra.mxu1 %v1555_v53  ;;  %v1686_v54 = vpop.permute.xlu0 %1685  ;;  %v818_v55 = vsel %vm470_vm3, %v1677_v1, %v1682_v33  ;;  %v819_v25 = vsel %vm470_vm3, %v1678_v47, %v1683_v51 }
 0x17d   : > { %v1688_v42 = vunpack.i.h.bf16 %v1686_v54  ;;  %v1687_v56 = vunpack.i.l.bf16 %v1686_v54  ;;  %v1691_v24 = vpop.permute.xlu1 %1690  ;;  %v1524_v23 = vpack.c.bf16 %v819_v25, %v818_v55  ;;  %1557 = vmatprep.subr.bf16.mxu1 %v1780_v52 }
 0x17e   : > { %v1693_v9 = vunpack.i.h.bf16 %v1691_v24  ;;  %v1692_v10 = vunpack.i.l.bf16 %v1691_v24 }
 0x17f   : > { %1525 = vmatprep.subr.bf16.mxu0 %v1524_v23  ;;  %v820_v62 = vsel %vm470_vm3, %v1687_v56, %v1677_v1  ;;  %v821_v63 = vsel %vm470_vm3, %v1688_v42, %v1678_v47  ;;  %v816_v0 = vsel %vm470_vm3, %v1682_v33, %v1687_v56  ;;  %v817_v3 = vsel %vm470_vm3, %v1683_v51, %v1688_v42 }
 0x180   : > { %v1696_v5 = vpop.permute.xlu0 %1695  ;;  %v1526_v26 = vpack.c.bf16 %v821_v63, %v820_v62  ;;  %v1558_v27 = vpack.c.bf16 %v817_v3, %v816_v0 }
 0x181   : > { %v1698_v18 = vunpack.i.h.bf16 %v1696_v5  ;;  %v1697_v28 = vunpack.i.l.bf16 %v1696_v5  ;;  %v1701_v35 = vpop.permute.xlu1 %1700 }
 0x182   : > { %v1703_v57 = vunpack.i.h.bf16 %v1701_v35  ;;  %v1702_v48 = vunpack.i.l.bf16 %v1701_v35  ;;  %1527 = vmatpush1.bf16.msra.mxu0 %v1526_v26  ;;  %1559 = vmatpush1.bf16.msra.mxu1 %v1558_v27 }
 0x183   : > { %1529 = vmatprep.subr.bf16.mxu0 %v1528_v43  ;;  %1560 = vmatprep.subr.bf16.mxu1 %v1780_v52  ;;  %v834_v21 = vsel %vm544_vm4, %v1692_v10, %v1697_v28  ;;  %v835_v58 = vsel %vm544_vm4, %v1693_v9, %v1698_v18 }
 0x184   : > { %v1706_v29 = vpop.permute.xlu0 %1705  ;;  %v1532_v30 = vpack.c.bf16 %v835_v58, %v834_v21  ;;  %v836_v8 = vsel %vm544_vm4, %v1702_v48, %v1692_v10  ;;  %v837_v31 = vsel %vm544_vm4, %v1703_v57, %v1693_v9  ;;  %v838_v36 = vsel %vm544_vm4, %v1697_v28, %v1702_v48 }
 0x185   : > { %v1708_v13 = vunpack.i.h.bf16 %v1706_v29  ;;  %v1707_v38 = vunpack.i.l.bf16 %v1706_v29  ;;  %v1711_v32 = vpop.permute.xlu1 %1710  ;;  %v839_v43 = vsel %vm544_vm4, %v1698_v18, %v1703_v57  ;;  %v1534_v41 = vpack.c.bf16 %v837_v31, %v836_v8 }
 0x186   : > { %v1713_v40 = vunpack.i.h.bf16 %v1711_v32  ;;  %v1712_v60 = vunpack.i.l.bf16 %v1711_v32  ;;  %1531 = vmatpush1.bf16.msra.mxu0 %v1530_v44  ;;  %1562 = vmatpush1.bf16.msra.mxu1 %v1561_v59  ;;  %v1564_v45 = vpack.c.bf16 %v839_v43, %v838_v36  ;;  %v311_v32 = vld [vmem:[%s2486_s4 + $0x10] sm:$0xff]  ;;  %v315_v36 = vld [vmem:[%s2488_s6] sm:$0xff]  ;;  %v1781_v43 = vmov 0.0  }
 0x187   : > { %1533 = vmatprep.subr.bf16.mxu0 %v1532_v30  ;;  %1563 = vmatprep.subr.bf16.mxu1 %v1780_v52 }
 0x188   : > { %v1716_v61 = vpop.permute.xlu0 %1715  ;;  %v852_v20 = vsel %vm586_vm5, %v1707_v38, %v1712_v60  ;;  %v853_v46 = vsel %vm586_vm5, %v1708_v13, %v1713_v40 }
 0x189   : > { %v1718_v16 = vunpack.i.h.bf16 %v1716_v61  ;;  %v1717_v49 = vunpack.i.l.bf16 %v1716_v61  ;;  %v1721_v11 = vpop.permute.xlu1 %1720  ;;  %v1536_v14 = vpack.c.bf16 %v853_v46, %v852_v20 }
 0x18a   : > { %1535 = vmatpush1.bf16.msra.mxu0 %v1534_v41  ;;  %1565 = vmatpush1.bf16.msra.mxu1 %v1564_v45  ;;  %v1723_v59 = vunpack.i.h.bf16 %v1721_v11  ;;  %v1722_v15 = vunpack.i.l.bf16 %v1721_v11 }
 0x18b   : > { %1537 = vmatprep.subr.bf16.mxu0 %v1536_v14  ;;  %1566 = vmatprep.subr.bf16.mxu1 %v1780_v52  ;;  %v854_v12 = vsel %vm586_vm5, %v1717_v49, %v1707_v38  ;;  %v855_v39 = vsel %vm586_vm5, %v1718_v16, %v1708_v13  ;;  %v856_v44 = vsel %vm586_vm5, %v1712_v60, %v1717_v49  ;;  %v312_v38 = vld [vmem:[%s2486_s4 + $0x18] sm:$0xff] }
 0x18c   : > { %v1726_v17 = vpop.permute.xlu0 %1725  ;;  %v1538_v47 = vpack.c.bf16 %v855_v39, %v854_v12  ;;  %v857_v1 = vsel %vm586_vm5, %v1713_v40, %v1718_v16 }
 0x18d   : > { %v1728_v50 = vunpack.i.h.bf16 %v1726_v17  ;;  %v1727_v22 = vunpack.i.l.bf16 %v1726_v17  ;;  %v1731_v51 = vpop.permute.xlu1 %1730  ;;  %v1567_v33 = vpack.c.bf16 %v857_v1, %v856_v44 }
 0x18e   : > { %v1733_v53 = vunpack.i.h.bf16 %v1731_v51  ;;  %v1732_v54 = vunpack.i.l.bf16 %v1731_v51  ;;  %1539 = vmatpush1.bf16.msra.mxu0 %v1538_v47 }
 0x18f   : > { %1568 = vmatpush1.bf16.msra.mxu1 %v1567_v33  ;;  %v870_v55 = vsel %vm628_vm6, %v1722_v15, %v1727_v22  ;;  %v871_v25 = vsel %vm628_vm6, %v1723_v59, %v1728_v50 }
 0x190   : > { %v1736_v42 = vpop.permute.xlu0 %1735  ;;  %v1540_v56 = vpack.c.bf16 %v871_v25, %v870_v55  ;;  %1569 = vmatprep.subr.bf16.mxu1 %v1780_v52  ;;  %v872_v24 = vsel %vm628_vm6, %v1732_v54, %v1722_v15  ;;  %v873_v23 = vsel %vm628_vm6, %v1733_v53, %v1723_v59  ;;  %v874_v62 = vsel %vm628_vm6, %v1727_v22, %v1732_v54 }
 0x191   : > { %v1738_v63 = vunpack.i.h.bf16 %v1736_v42  ;;  %v1737_v0 = vunpack.i.l.bf16 %v1736_v42  ;;  %v1741_v3 = vpop.permute.xlu1 %1740  ;;  %v1542_v5 = vpack.c.bf16 %v873_v23, %v872_v24  ;;  %v875_v26 = vsel %vm628_vm6, %v1728_v50, %v1733_v53 }
 0x192   : > { %v1743_v27 = vunpack.i.h.bf16 %v1741_v3  ;;  %v1742_v9 = vunpack.i.l.bf16 %v1741_v3  ;;  %1541 = vmatprep.subr.bf16.mxu0 %v1540_v56  ;;  %v1570_v10 = vpack.c.bf16 %v875_v26, %v874_v62  ;;  %v316_v62 = vld [vmem:[%s2488_s6 + $0x8] sm:$0x1] }
 0x193   : > { %1543 = vmatpush1.bf16.msra.mxu0 %v1542_v5 }
 0x194   : > { %1571 = vmatpush1.bf16.msra.mxu1 %v1570_v10  ;;  %v1746_v18 = vpop.permute.xlu0 %1745  ;;  %v888_v28 = vsel %vm670_vm7, %v1737_v0, %v1742_v9  ;;  %v889_v35 = vsel %vm670_vm7, %v1738_v63, %v1743_v27 }
 0x195   : > { %v1748_v57 = vunpack.i.h.bf16 %v1746_v18  ;;  %v1747_v48 = vunpack.i.l.bf16 %v1746_v18  ;;  %v1544_v21 = vpack.c.bf16 %v889_v35, %v888_v28  ;;  %1572 = vmatprep.subr.bf16.mxu1 %v1780_v52  ;;  %v309_v52 = vld [vmem:[%s2486_s4] sm:$0xff] }
 0x197   : > { %1545 = vmatprep.subr.bf16.mxu0 %v1544_v21  ;;  %v890_v58 = vsel %vm670_vm7, %v1747_v48, %v1737_v0  ;;  %v891_v29 = vsel %vm670_vm7, %v1748_v57, %v1738_v63  ;;  %v892_v30 = vsel %vm670_vm7, %v1742_v9, %v1747_v48  ;;  %v893_v8 = vsel %vm670_vm7, %v1743_v27, %v1748_v57 }
 0x198   : > { %v1546_v31 = vpack.c.bf16 %v891_v29, %v890_v58  ;;  %v1573_v13 = vpack.c.bf16 %v893_v8, %v892_v30 }
 0x19a   : > { %1547 = vmatpush1.bf16.msra.mxu0 %v1546_v31  ;;  %1574 = vmatpush1.bf16.msra.mxu1 %v1573_v13 }
 0x19d   : > { %976 = vmatmul.mubr.f32.vlgmr.msra.gmra.mrb[0].mxu0 %v309_v52  ;;  %1053 = vmatmul.mubr.f32.vlgmr.msra.gmra.mrb[0].mxu1 %v309_v52 }
 0x19e   : > { %1489 = vmatprep.mubr.msk.f32.mxu0 %vm904_vm8, %v312_v38  ;;  %1491 = vmatprep.mubr.msk.f32.mxu1 %vm904_vm8, %v312_v38 }
 0x1a1   : > { %982 = vmatmul.mubr.f32.gmra.mrb[2].mxu0 %v311_v32  ;;  %1058 = vmatmul.mubr.f32.gmra.mrb[2].mxu1 %v311_v32 }
 0x1a2   : > { %1509 = vmatprep.mubr.msk.f32.mxu1 %vm904_vm8, %v315_v36  ;;  %1145 = vmatprep.mubr.f32.mxu0 %v1781_v43  ;;  %v897_v40 = vpop.permute.xlu1 %896 }
 0x1a5   : > { %v902_v49 = vpop.permute.xlu0 %901 }
 0x1a9   : > { %v2417_v38 = vpop.permute.xlu0 %1379 }
 0x270   : > { %v977_v60 = vpop.f32.mrb[0].mxu0  ;;  %v1054_v61 = vpop.f32.mrb[0].mxu1 }
 0x271   : > { %v978_v41 = vadd.f32 %v977_v60, %v897_v40  ;;  %v1055_v45 = vadd.f32 %v1054_v61, %v897_v40  ;;  %v979_v20 = vpop.f32.mrb[1].mxu0  ;;  %v1056_v46 = vpop.f32.mrb[1].mxu1 }
 0x272   : > { %v980_v16 = vadd.f32 %v979_v20, %v897_v40 }
 0x273   : > { %v1063_v12 = vmax.f32 %v978_v41, 0.0  ;;  %v1065_v39 = vmax.f32 %v1055_v45, 0.0 }
 0x274   : > { %v983_v11 = vpop.f32.mrb[2].mxu0  ;;  %v1059_v14 = vpop.f32.mrb[2].mxu1  ;;  %v1064_v1 = vmax.f32 %v980_v16, 0.0 }
 0x275   : > { %v984_v44 = vadd.f32 %v983_v11, %v902_v49  ;;  %v1060_v59 = vadd.f32 %v1059_v14, %v902_v49  ;;  %v985_v17 = vpop.f32.mrb[3].mxu0  ;;  %v1061_v47 = vpop.f32.mrb[3].mxu1  ;;  %v1069_v33 = vmul.f32 %v1063_v12, %v2150_v4  ;;  %v1071_v53 = vmul.f32 %v1065_v39, %v2158_v37 }
 0x276   : > { %v986_v15 = vadd.f32 %v985_v17, %v902_v49  ;;  %v1070_v25 = vmul.f32 %v1064_v1, %v2154_v19 }
 0x277   : > { %v1066_v50 = vmax.f32 %v984_v44, 0.0  ;;  %v1068_v22 = vmax.f32 %v1060_v59, 0.0 }
 0x278   : > { %v1067_v51 = vmax.f32 %v986_v15, 0.0 }
 0x279   : > { %v1072_v54 = vmul.f32 %v1066_v50, %v2150_v4  ;;  %v1074_v55 = vmul.f32 %v1068_v22, %v2158_v37 }
 0x27a   : > { %v1073_v42 = vmul.f32 %v1067_v51, %v2154_v19 }
 0x27b   : > { %v1577_v56 = vpack.c.bf16 %v1072_v54, %v1069_v33  ;;  %v1579_v24 = vpack.c.bf16 %v1074_v55, %v1071_v53 }
 0x27c   : > { %v1575_v23 = vpack.c.bf16 %v1073_v42, %v1070_v25 }
 0x27d   : > { %1580 = vmatprep.subr.bf16.mxu1 %v1579_v24 }
 0x27e   : > { %1576 = vmatprep.subr.bf16.mxu0 %v1575_v23  ;;  %1582 = vmatpush3.bf16.msra.mxu1 %v1579_v24 }
 0x27f   : > { %1578 = vmatpush1.bf16.msra.mxu0 %v1577_v56 }
 0x281   : > { %1510 = vmatmul.mubr.msk.f32.vlgmr.msra.gmra.mrb[4].mxu1 %vm904_vm8, %v316_v62 }
 0x282   : > { %1492 = vmatmul.mubr.msk.f32.vlgmr.msra.gmra.mrb[4].mxu0 %vm904_vm8, %v315_v36 }
 0x283   : > { %1151 = vmatprep.mubr.f32.mxu0 %v1781_v43 }
 0x286   : > { %1493 = vmatmul.mubr.msk.f32.gmra.mrb[6].mxu0 %vm904_vm8, %v316_v62 }
 0x354   : > { %v1511_v4 = vpop.f32.mrb[4].mxu1 }
 0x355   : > { %v2366_v19 = vpop.f32.mrb[4].mxu0  ;;  %v2368_v37 = vpop.f32.mrb[5].mxu1 }
 0x356   : > { %1237 = vrot.lane.b32.xlu1 %v2368_v37, %s1766_s16  ;;  %v2372_v63 = vpop.f32.mrb[5].mxu0  ;;  %v1250_v0 = vrot.slane %v2368_v37, 1  ;;  %v1268_v26 = vrot.slane %v2368_v37, 2  ;;  %v1286_v27 = vrot.slane %v2368_v37, 3  ;;  %v1313_v9 = vrot.slane %v2368_v37, 5 }
 0x357   : > { %1235 = vrot.lane.b32.xlu0 %v2372_v63, %s1766_s16  ;;  %v1349_v10 = vrot.slane %v2368_v37, 7  ;;  %v1331_v18 = vrot.slane %v2368_v37, 6  ;;  %v1248_v28 = vrot.slane %v2366_v19, 1  ;;  %v1266_v35 = vrot.slane %v2366_v19, 2 }
 0x358   : > { %v1284_v57 = vrot.slane %v2366_v19, 3  ;;  %v1311_v48 = vrot.slane %v2366_v19, 5  ;;  %v1347_v21 = vrot.slane %v2366_v19, 7  ;;  %v1329_v58 = vrot.slane %v2366_v19, 6 }
 0x359   : > { %v1153_v3 = vpop.f32.mrb[6].mxu0  ;;  %v1267_v29 = vrot.slane %v2372_v63, 2  ;;  %v1249_v30 = vrot.slane %v2372_v63, 1  ;;  %v1312_v8 = vrot.slane %v2372_v63, 5  ;;  %v1285_v31 = vrot.slane %v2372_v63, 3 }
 0x35a   : > { %1233 = vrot.lane.b32.xlu1 %v2366_v19, %s1766_s16  ;;  %v1155_v5 = vpop.f32.mrb[7].mxu0  ;;  %v1330_v13 = vrot.slane %v2372_v63, 6  ;;  %v1348_v52 = vrot.slane %v2372_v63, 7  ;;  %v1302_v56 = vrot.slane %v2366_v19, 4 }
 0x35b   : > { %1258 = vrot.lane.b32.xlu0 %v1250_v0, %s1768_s17 }
 0x35e   : > { %1276 = vrot.lane.b32.xlu1 %v1268_v26, %s1769_s18  ;;  %v1303_v26 = vrot.slane %v2372_v63, 4 }
 0x35f   : > { %1294 = vrot.lane.b32.xlu0 %v1286_v27, %s1771_s19  ;;  %v1304_v27 = vrot.slane %v2368_v37, 4 }
 0x362   : > { %1321 = vrot.lane.b32.xlu1 %v1313_v9, %s1773_s20 }
 0x363   : > { %1357 = vrot.lane.b32.xlu0 %v1349_v10, %s1778_s22 }
 0x366   : > { %1339 = vrot.lane.b32.xlu1 %v1331_v18, %s1776_s21 }
 0x367   : > { %1254 = vrot.lane.b32.xlu0 %v1248_v28, %s1768_s17 }
 0x36a   : > { %1272 = vrot.lane.b32.xlu1 %v1266_v35, %s1769_s18 }
 0x36b   : > { %1290 = vrot.lane.b32.xlu0 %v1284_v57, %s1771_s19 }
 0x36e   : > { %1317 = vrot.lane.b32.xlu1 %v1311_v48, %s1773_s20 }
 0x36f   : > { %1353 = vrot.lane.b32.xlu0 %v1347_v21, %s1778_s22 }
 0x372   : > { %1335 = vrot.lane.b32.xlu1 %v1329_v58, %s1776_s21 }
 0x373   : > { %1274 = vrot.lane.b32.xlu0 %v1267_v29, %s1769_s18  ;;  %s302_s18 = scalar_lea.vmem %s2490_s8, %s1583_s12 }
 0x376   : > { %1256 = vrot.lane.b32.xlu1 %v1249_v30, %s1768_s17 }
 0x377   : > { %1319 = vrot.lane.b32.xlu0 %v1312_v8, %s1773_s20 }
 0x37a   : > { %1292 = vrot.lane.b32.xlu1 %v1285_v31, %s1771_s19 }
 0x37b   : > { %1337 = vrot.lane.b32.xlu0 %v1330_v13, %s1776_s21 }
 0x37e   : > { %1355 = vrot.lane.b32.xlu1 %v1348_v52, %s1778_s22 }
 0x37f   : > { %1367 = vrot.lane.b32.xlu0 %v1155_v5, %s1779_s23 }
 0x382   : > { %1365 = vrot.lane.b32.xlu1 %v1153_v3, %s1779_s23 }
 0x386   : > { %1369 = vrot.lane.b32.xlu1 %v1511_v4, %s1779_s23 }
 0x3c8   : > { %v1238_v32 = vpop.permute.xlu1 %1237 }
 0x3c9   : > { %v1236_v36 = vpop.permute.xlu0 %1235 }
 0x3ca   : > { %v1239_v51 = vsel %vm342_vm1, %v1236_v36, %v1238_v32 }
 0x3cc   : > { %v1234_v43 = vpop.permute.xlu1 %1233 }
 0x3cd   : > { %v1259_v40 = vpop.permute.xlu0 %1258  ;;  %v1241_v14 = vsel %vm342_vm1, %v1238_v32, %v1234_v43  ;;  %v1240_v33 = vsel %vm342_vm1, %v1234_v43, %v1236_v36 }
 0x3d0   : > { %v1277_v60 = vpop.permute.xlu1 %1276 }
 0x3d1   : > { %v1295_v61 = vpop.permute.xlu0 %1294 }
 0x3d4   : > { %v1322_v41 = vpop.permute.xlu1 %1321 }
 0x3d5   : > { %v1358_v45 = vpop.permute.xlu0 %1357 }
 0x3d8   : > { %v1340_v20 = vpop.permute.xlu1 %1339 }
 0x3d9   : > { %v1255_v46 = vpop.permute.xlu0 %1254 }
 0x3da   : > { %v1262_v49 = vsel %vm386_vm0, %v1259_v40, %v1255_v46 }
 0x3db   : > { %v1263_v12 = vadd.f32 %v1262_v49, %v1241_v14 }
 0x3dc   : > { %v1273_v16 = vpop.permute.xlu1 %1272 }
 0x3dd   : > { %v1291_v11 = vpop.permute.xlu0 %1290  ;;  %v1280_v44 = vsel %vm428_vm2, %v1277_v60, %v1273_v16 }
 0x3de   : > { %v1281_v17 = vadd.f32 %v1280_v44, %v1263_v12  ;;  %v1298_v1 = vsel %vm470_vm3, %v1295_v61, %v1291_v11 }
 0x3e0   : > { %v1318_v39 = vpop.permute.xlu1 %1317  ;;  %v1299_v50 = vadd.f32 %v1298_v1, %v1281_v17 }
 0x3e1   : > { %v1354_v59 = vpop.permute.xlu0 %1353  ;;  %v1325_v37 = vsel %vm544_vm4, %v1322_v41, %v1318_v39 }
 0x3e2   : > { %v1308_v4 = vadd.f32 %v1302_v56, %v1299_v50 }
 0x3e4   : > { %v1336_v47 = vpop.permute.xlu1 %1335 }
 0x3e5   : > { %v1275_v15 = vpop.permute.xlu0 %1274  ;;  %v1343_v52 = vsel %vm586_vm5, %v1340_v20, %v1336_v47 }
 0x3e6   : > { %v1278_v24 = vsel %vm428_vm2, %v1275_v15, %v1277_v60  ;;  %v1279_v23 = vsel %vm428_vm2, %v1273_v16, %v1275_v15  ;;  %v1361_v16 = vsel %vm628_vm6, %v1358_v45, %v1354_v59 }
 0x3e8   : > { %v1257_v22 = vpop.permute.xlu1 %1256 }
 0x3e9   : > { %v1260_v53 = vsel %vm386_vm0, %v1257_v22, %v1259_v40  ;;  %v1261_v54 = vsel %vm386_vm0, %v1255_v46, %v1257_v22  ;;  %v1320_v55 = vpop.permute.xlu0 %1319 }
 0x3ea   : > { %v1264_v25 = vadd.f32 %v1261_v54, %v1240_v33  ;;  %v1265_v42 = vadd.f32 %v1260_v53, %v1239_v51  ;;  %v1324_v62 = vsel %vm544_vm4, %v1318_v39, %v1320_v55  ;;  %v1323_v63 = vsel %vm544_vm4, %v1320_v55, %v1322_v41 }
 0x3eb   : > { %v1326_v18 = vadd.f32 %v1324_v62, %v1308_v4  ;;  %v1385_v41 = vrot.slane %v2417_v38, %v1862_v7 }
 0x3ec   : > { %v1282_v0 = vadd.f32 %v1279_v23, %v1264_v25  ;;  %v1283_v3 = vadd.f32 %v1278_v24, %v1265_v42  ;;  %v1293_v5 = vpop.permute.xlu1 %1292 }
 0x3ed   : > { %v1296_v19 = vsel %vm470_vm3, %v1293_v5, %v1295_v61  ;;  %v1297_v9 = vsel %vm470_vm3, %v1291_v11, %v1293_v5  ;;  %v1338_v10 = vpop.permute.xlu0 %1337 }
 0x3ee   : > { %v1300_v28 = vadd.f32 %v1297_v9, %v1282_v0  ;;  %v1301_v35 = vadd.f32 %v1296_v19, %v1283_v3  ;;  %v1342_v57 = vsel %vm586_vm5, %v1336_v47, %v1338_v10  ;;  %v1341_v32 = vsel %vm586_vm5, %v1338_v10, %v1340_v20 }
 0x3ef   : > { %v1344_v58 = vadd.f32 %v1342_v57, %v1326_v18 }
 0x3f0   : > { %v1309_v48 = vadd.f32 %v1303_v26, %v1300_v28  ;;  %v1310_v21 = vadd.f32 %v1304_v27, %v1301_v35  ;;  %v1356_v29 = vpop.permute.xlu1 %1355 }
 0x3f1   : > { %v1360_v30 = vsel %vm628_vm6, %v1354_v59, %v1356_v29  ;;  %v1368_v13 = vpop.permute.xlu0 %1367  ;;  %v1359_v49 = vsel %vm628_vm6, %v1356_v29, %v1358_v45  ;;  %v1782_v59 = vmov 1966171168  }
 0x3f2   : > { %v1328_v8 = vadd.f32 %v1325_v37, %v1310_v21  ;;  %v1327_v31 = vadd.f32 %v1323_v63, %v1309_v48  ;;  %v1362_v43 = vadd.f32 %v1360_v30, %v1344_v58  ;;  %v1403_v45 = vunpack.c.l.s4 %v1782_v59 }
 0x3f4   : > { %v1345_v36 = vadd.f32 %v1341_v32, %v1327_v31  ;;  %v1366_v40 = vpop.permute.xlu1 %1365  ;;  %v1346_v60 = vadd.f32 %v1343_v52, %v1328_v8  ;;  %v1404_v1 = vunpack.c.0.s8 %v1403_v45 }
 0x3f5   : > { %v1372_v61 = vsel %vm670_vm7, %v1366_v40, %v1368_v13 }
 0x3f6   : > { %v1374_v46 = vadd.f32 %v1372_v61, %v1362_v43  ;;  %v1363_v11 = vadd.f32 %v1359_v49, %v1345_v36  ;;  %v1364_v20 = vadd.f32 %v1361_v16, %v1346_v60  ;;  %v1407_v33 = vsub.s32 %v1404_v1, %v1853_v6 }
 0x3f8   : > { %v1386_v14 = vadd.f32 %v1385_v41, %v1374_v46  ;;  %v1370_v12 = vpop.permute.xlu1 %1369 }
 0x3f9   : > { %v1371_v39 = vsel %vm670_vm7, %v1368_v13, %v1370_v12  ;;  %v1373_v44 = vsel %vm670_vm7, %v1370_v12, %v1366_v40 }
 0x3fa   : > { %v1375_v17 = vadd.f32 %v1371_v39, %v1363_v11  ;;  %v1376_v47 = vadd.f32 %v1373_v44, %v1364_v20  ;;  %1749 = vtanh.f32 %v1386_v14 }
 0x3fc   : > { %v1387_v7 = vadd.f32 %v1385_v41, %v1375_v17  ;;  %v1388_v38 = vadd.f32 %v1385_v41, %v1376_v47 }
 0x3fe   : > { %1751 = vtanh.f32 %v1387_v7 }
 0x3ff   : > { %1753 = vtanh.f32 %v1388_v38 }
 0x404   : > { %v1750_v15 = vpop.eup %1749 }
 0x405   : > { %v1496_v51 = vclamps-f32 %v1750_v15, 1.0 }
 0x408   : > { %v1752_v50 = vpop.eup %1751 }
 0x409   : > { %v1754_v22 = vpop.eup %1753  ;;  %v1497_v53 = vclamps-f32 %v1752_v50, 1.0 }
 0x40a   : > { %v1498_v34 = vclamps-f32 %v1754_v22, 1.0 }
 0x40b   : > { %v1401_v54 = vcombine.low %v1496_v51, %v1497_v53 }
 0x40c   : > { %v1415_v25 = vrot.slane %v1498_v34, %v1407_v33 }
 0x40d   : > { %v1408_v55 = vrot.slane %v1401_v54, %v1407_v33 }
 0x40f   : > { %v1416_v42 = vcombine.low %v1408_v55, %v1415_v25 }
 0x411   : > { %v1423_v56 = vrot.slane %v1416_v42, %v1407_v33 }
 0x413   : > { %1429 = vst.msk [vmem:[%s302_s18] sm:$0x7] %vm1427_vm9, %v1423_v56 }
 0x414 PF: > { %s20_s29 = sadd.s32 1, %s1761_s29  }
 0x415   : > { %p17_p4 = scmp.ge.s32.totalorder %s20_s29, 4  }
 0x417   :  { %19 = sbr.rel (!%p17_p4) target bundleno = 3 (0x3), region = 82 }

</bundles_post_ra>
